<compile_context>
chip_gen: v7x
topology: tpu7x:2x2x1
jax: 0.10.0
libtpu: 0.0.40
codegen_flags: <defaults>
</compile_context>

<pallas_src>
import math
import jax
import jax.numpy as jnp
from jax import lax
from jax.experimental import pallas as pl
from jax.experimental.pallas import tpu as pltpu

_INV_SQRT2 = 1.0 / math.sqrt(2.0)
_LN_EPS = 1e-5


def _ffn_residual_nchw_kernel(x_ref, w1_ref, b1_ref, w2_ref, b2_ref, o_ref):
    """One (C, TN) token tile of  out = x + Lin2(GELU(Lin1(LayerNorm_c(x)))).

    Channels on sublanes, tokens on lanes (NCHW-native), so no layout
    transposes are needed anywhere.  gamma/beta are pre-folded into w1/b1.
    """
    x = x_ref[...].astype(jnp.float32)                        # (C, TN)

    # --- LayerNorm over channels (axis 0), eps=1e-5, biased variance ---
    mean = jnp.mean(x, axis=0, keepdims=True)                 # (1, TN)
    cent = x - mean
    var = jnp.mean(cent * cent, axis=0, keepdims=True)
    y = cent * lax.rsqrt(var + _LN_EPS)                       # affine folded away

    # --- Linear(C -> 4C): bf16 operands on the MXU, fp32 accumulate ---
    h = jnp.dot(w1_ref[...], y.astype(jnp.bfloat16),
                preferred_element_type=jnp.float32) + b1_ref[...]   # (4C, TN)
    # exact GELU (erf) to match nn.GELU() default
    h = 0.5 * h * (1.0 + lax.erf(h * _INV_SQRT2))

    # --- Linear(4C -> C) ---
    out = jnp.dot(w2_ref[...], h.astype(jnp.bfloat16),
                  preferred_element_type=jnp.float32) + b2_ref[...]  # (C, TN)

    # --- residual add against the un-normalized input ---
    o_ref[...] = (x + out).astype(o_ref.dtype)


def _round_up(a, b):
    return (a + b - 1) // b * b


def transformer_forward(x_nchw, params, *, tile_n=512):
    """x_nchw: (B, C, H, W).  Returns x + ff(x), same shape / dtype."""
    B, C, H, W = x_nchw.shape
    hw = H * W
    hidden = params["w1"].shape[1]

    # Fold LayerNorm affine into the first linear (one-time, fp32):
    #   (n*gamma + beta) @ W1 + b1 == n @ (gamma[:,None] * W1) + (beta @ W1 + b1)
    gamma = params["gamma"].astype(jnp.float32)
    beta = params["beta"].astype(jnp.float32)
    w1_f32 = params["w1"].astype(jnp.float32)
    w1_folded = w1_f32 * gamma[:, None]                               # (C, 4C)
    b1_folded = beta @ w1_f32 + params["b1"].astype(jnp.float32)      # (4C,)

    # Kernel consumes channels-x-tokens tiles -> pre-transpose the *small*
    # weights once instead of transposing the activations.
    w1t = w1_folded.T.astype(jnp.bfloat16)                            # (4C, C)
    w2t = params["w2"].astype(jnp.float32).T.astype(jnp.bfloat16)     # (C, 4C)
    b1c = b1_folded.reshape(hidden, 1)
    b2c = params["b2"].astype(jnp.float32).reshape(C, 1)

    # Token tiling: minor dim must be a multiple of 128 or the full extent.
    if hw <= tile_n:
        tn, hw_p = hw, hw
    else:
        tn = max(128, (min(tile_n, hw) // 128) * 128)
        hw_p = _round_up(hw, tn)

    x_flat = x_nchw.reshape(B, C, hw)
    if hw_p != hw:
        # Zero padding is safe: LN of an all-zero token stays finite (eps>0);
        # the padded tokens are sliced off below.
        x_flat = jnp.pad(x_flat, ((0, 0), (0, 0), (0, hw_p - hw)))

    grid = (B, hw_p // tn)

    # VMEM budget: double-buffered fp32 in/out tiles + single-copy bf16
    # weights + fp32 hidden activation + bf16 operand copies; 2x headroom,
    # clamped to the 64 MiB physical VMEM of v7x.
    vmem_bytes = (
        4 * C * tn * 4                      # in/out fp32 tiles, double-buffered
        + 4 * C * hidden                    # bf16 w1t + w2t (resident, 1 copy)
        + 4 * (hidden + C)                  # fp32 biases
        + hidden * tn * 4                   # fp32 hidden activation
        + (C + hidden) * tn * 2             # bf16 matmul operand copies
    )
    vmem_limit = int(min(max(2 * vmem_bytes, 16 << 20), 64 << 20))

    cost = pl.CostEstimate(
        flops=2 * 2 * B * hw_p * C * hidden,                          # two matmuls
        transcendentals=B * hw_p * hidden,                            # erf
        bytes_accessed=2 * B * hw_p * C * 4 + 4 * C * hidden + 4 * (hidden + C),
    )

    vmem = pltpu.MemorySpace.VMEM
    out = pl.pallas_call(
        _ffn_residual_nchw_kernel,
        out_shape=jax.ShapeDtypeStruct((B, C, hw_p), x_nchw.dtype),
        grid=grid,
        in_specs=[
            pl.BlockSpec((None, C, tn), lambda b, n: (b, 0, n)),  # x tile (pipelined)
            pl.BlockSpec(memory_space=vmem),                      # w1t (resident)
            pl.BlockSpec(memory_space=vmem),                      # b1
            pl.BlockSpec(memory_space=vmem),                      # w2t
            pl.BlockSpec(memory_space=vmem),                      # b2
        ],
        out_specs=pl.BlockSpec((None, C, tn), lambda b, n: (b, 0, n)),
        compiler_params=pltpu.CompilerParams(
            dimension_semantics=("parallel", "parallel"),
            vmem_limit_bytes=vmem_limit,
        ),
        cost_estimate=cost,
    )(x_flat, w1t, b1c, w2t, b2c)

    if hw_p != hw:
        out = out[:, :, :hw]
    return out.reshape(B, C, H, W)


def init_params(key, inp, oup):
    # hidden_dim = int(inp * 4); FeedForward(dim=oup, hidden_dim)
    hidden = int(inp * 4)
    k1, k2, k3, k4 = jax.random.split(key, 4)
    # PyTorch nn.Linear default init: U(-1/sqrt(fan_in), 1/sqrt(fan_in))
    lim1 = 1.0 / math.sqrt(oup)
    lim2 = 1.0 / math.sqrt(hidden)
    return {
        "gamma": jnp.ones((oup,), jnp.float32),      # nn.LayerNorm default
        "beta": jnp.zeros((oup,), jnp.float32),
        # Linear(oup, hidden): weight stored transposed as (oup, hidden) for x @ W
        "w1": jax.random.uniform(k1, (oup, hidden), jnp.float32, -lim1, lim1),
        "b1": jax.random.uniform(k2, (hidden,), jnp.float32, -lim1, lim1),
        # Linear(hidden, oup)
        "w2": jax.random.uniform(k3, (hidden, oup), jnp.float32, -lim2, lim2),
        "b2": jax.random.uniform(k4, (oup,), jnp.float32, -lim2, lim2),
    }


def reference_forward(x_nchw, params):
    """Pure-JAX reference with the un-folded parameters."""
    B, C, H, W = x_nchw.shape
    x = jnp.transpose(x_nchw, (0, 2, 3, 1)).reshape(B, H * W, C)
    mean = jnp.mean(x, axis=-1, keepdims=True)
    var = jnp.mean((x - mean) ** 2, axis=-1, keepdims=True)
    y = (x - mean) / jnp.sqrt(var + _LN_EPS) * params["gamma"] + params["beta"]
    h = y @ params["w1"] + params["b1"]
    h = 0.5 * h * (1.0 + lax.erf(h / math.sqrt(2.0)))
    out = x + (h @ params["w2"] + params["b2"])
    return jnp.transpose(out.reshape(B, H, W, C), (0, 3, 1, 2))


if __name__ == "__main__":
    key = jax.random.PRNGKey(0)
    kx, kp, kg, kb = jax.random.split(key, 4)

    # downsample=False requires inp == oup for the residual to close; C=128 so
    # the channel (sublane) dim is a full vreg-friendly width, as in the real
    # CoAtNet stages where this block is used.
    B, C, H, W = 2, 128, 16, 16          # tokens/batch = 256, hidden = 512
    x = jax.random.normal(kx, (B, C, H, W), jnp.float32)
    params = init_params(kp, inp=C, oup=C)
    # Perturb the LayerNorm affine away from (ones, zeros) so the gamma/beta
    # -> w1/b1 folding path is actually exercised by the check below.
    params["gamma"] = params["gamma"] + 0.1 * jax.random.normal(kg, (C,), jnp.float32)
    params["beta"] = 0.1 * jax.random.normal(kb, (C,), jnp.float32)

    fwd = jax.jit(transformer_forward)
    out = jax.block_until_ready(fwd(x, params))
    ref = reference_forward(x, params)

    assert out.shape == (B, C, H, W)
    err = float(jnp.max(jnp.abs(out - ref)))
    # bf16 MXU operands (fp32 accumulate) => slightly looser tolerance vs fp32 ref.
    assert jnp.allclose(out, ref, atol=5e-2, rtol=5e-2), err

    print("KERNEL_OK")
</pallas_src>

<mosaic_0001>
module attributes {stable_mosaic.version = 11 : i64} {
  func.func @_ffn_residual_nchw_kernel(%arg0: i32, %arg1: i32, %arg2: memref<1x128x256xf32, #tpu.memory_space<vmem>>, %arg3: memref<512x128xbf16, #tpu.memory_space<vmem>>, %arg4: memref<512x1xf32, #tpu.memory_space<vmem>>, %arg5: memref<128x512xbf16, #tpu.memory_space<vmem>>, %arg6: memref<128x1xf32, #tpu.memory_space<vmem>>, %arg7: memref<1x128x256xf32, #tpu.memory_space<vmem>>) attributes {dimension_semantics = [#tpu.dimension_semantics<parallel>, #tpu.dimension_semantics<parallel>], iteration_bounds = array<i64: 2, 1>, scalar_prefetch = 0 : i64, scratch_operands = 0 : i64, tpu.core_type = #tpu.core_type<tc>, window_params = [{transform_indices = @transform_0, window_bounds = array<i64: 1, 128, 256>}, {pipeline_mode = #tpu.pipeline_mode<synchronous>, transform_indices = @transform_1, window_bounds = array<i64: 512, 128>}, {pipeline_mode = #tpu.pipeline_mode<synchronous>, transform_indices = @transform_2, window_bounds = array<i64: 512, 1>}, {pipeline_mode = #tpu.pipeline_mode<synchronous>, transform_indices = @transform_3, window_bounds = array<i64: 128, 512>}, {pipeline_mode = #tpu.pipeline_mode<synchronous>, transform_indices = @transform_4, window_bounds = array<i64: 128, 1>}, {transform_indices = @transform_5, window_bounds = array<i64: 1, 128, 256>}]} {
    %c0 = arith.constant 0 : index
    %c0_0 = arith.constant 0 : index
    %c0_1 = arith.constant 0 : index
    %0 = vector.load %arg2[%c0, %c0_0, %c0_1] : memref<1x128x256xf32, #tpu.memory_space<vmem>>, vector<1x128x256xf32>
    %1 = vector.shape_cast %0 : vector<1x128x256xf32> to vector<128x256xf32>
    %cst = arith.constant dense<0.000000e+00> : vector<256xf32>
    %2 = vector.multi_reduction <add>, %1, %cst [0] : vector<128x256xf32> to vector<256xf32>
    %3 = vector.shape_cast %2 : vector<256xf32> to vector<1x256xf32>
    %cst_2 = arith.constant 1.280000e+02 : f32
    %4 = vector.broadcast %cst_2 : f32 to vector<1x256xf32>
    %5 = arith.divf %3, %4 : vector<1x256xf32>
    %6 = vector.broadcast %5 : vector<1x256xf32> to vector<128x256xf32>
    %7 = arith.subf %1, %6 : vector<128x256xf32>
    %8 = arith.mulf %7, %7 : vector<128x256xf32>
    %cst_3 = arith.constant dense<0.000000e+00> : vector<256xf32>
    %9 = vector.multi_reduction <add>, %8, %cst_3 [0] : vector<128x256xf32> to vector<256xf32>
    %10 = vector.shape_cast %9 : vector<256xf32> to vector<1x256xf32>
    %cst_4 = arith.constant 1.280000e+02 : f32
    %11 = vector.broadcast %cst_4 : f32 to vector<1x256xf32>
    %12 = arith.divf %10, %11 : vector<1x256xf32>
    %cst_5 = arith.constant 9.99999974E-6 : f32
    %13 = vector.broadcast %cst_5 : f32 to vector<1x256xf32>
    %14 = arith.addf %12, %13 : vector<1x256xf32>
    %15 = math.rsqrt %14 : vector<1x256xf32>
    %16 = vector.broadcast %15 : vector<1x256xf32> to vector<128x256xf32>
    %17 = arith.mulf %7, %16 : vector<128x256xf32>
    %c0_6 = arith.constant 0 : index
    %c0_7 = arith.constant 0 : index
    %18 = vector.load %arg3[%c0_6, %c0_7] : memref<512x128xbf16, #tpu.memory_space<vmem>>, vector<512x128xbf16>
    %19 = arith.truncf %17 : vector<128x256xf32> to vector<128x256xbf16>
    %cst_8 = arith.constant dense<0.000000e+00> : vector<512x256xf32>
    %20 = tpu.matmul %18, %19, %cst_8 {dimension_numbers = #tpu.dot_dimension_numbers<[1], [0], [0], [1], [0, 0, 1, 1], [], []>} : vector<512x128xbf16>, vector<128x256xbf16>, vector<512x256xf32> -> vector<512x256xf32>
    %c0_9 = arith.constant 0 : index
    %c0_10 = arith.constant 0 : index
    %21 = vector.load %arg4[%c0_9, %c0_10] : memref<512x1xf32, #tpu.memory_space<vmem>>, vector<512x1xf32>
    %22 = vector.broadcast %21 : vector<512x1xf32> to vector<512x256xf32>
    %23 = arith.addf %20, %22 : vector<512x256xf32>
    %cst_11 = arith.constant 5.000000e-01 : f32
    %24 = vector.broadcast %cst_11 : f32 to vector<512x256xf32>
    %25 = arith.mulf %24, %23 : vector<512x256xf32>
    %cst_12 = arith.constant 0.707106769 : f32
    %26 = vector.broadcast %cst_12 : f32 to vector<512x256xf32>
    %27 = arith.mulf %23, %26 : vector<512x256xf32>
    %28 = math.erf %27 : vector<512x256xf32>
    %cst_13 = arith.constant 1.000000e+00 : f32
    %29 = vector.broadcast %cst_13 : f32 to vector<512x256xf32>
    %30 = arith.addf %29, %28 : vector<512x256xf32>
    %31 = arith.mulf %25, %30 : vector<512x256xf32>
    %c0_14 = arith.constant 0 : index
    %c0_15 = arith.constant 0 : index
    %32 = vector.load %arg5[%c0_14, %c0_15] : memref<128x512xbf16, #tpu.memory_space<vmem>>, vector<128x512xbf16>
    %33 = arith.truncf %31 : vector<512x256xf32> to vector<512x256xbf16>
    %cst_16 = arith.constant dense<0.000000e+00> : vector<128x256xf32>
    %34 = tpu.matmul %32, %33, %cst_16 {dimension_numbers = #tpu.dot_dimension_numbers<[1], [0], [0], [1], [0, 0, 1, 1], [], []>} : vector<128x512xbf16>, vector<512x256xbf16>, vector<128x256xf32> -> vector<128x256xf32>
    %c0_17 = arith.constant 0 : index
    %c0_18 = arith.constant 0 : index
    %35 = vector.load %arg6[%c0_17, %c0_18] : memref<128x1xf32, #tpu.memory_space<vmem>>, vector<128x1xf32>
    %36 = vector.broadcast %35 : vector<128x1xf32> to vector<128x256xf32>
    %37 = arith.addf %34, %36 : vector<128x256xf32>
    %38 = arith.addf %1, %37 : vector<128x256xf32>
    %c0_19 = arith.constant 0 : index
    %c0_20 = arith.constant 0 : index
    %c0_21 = arith.constant 0 : index
    %39 = vector.load %arg7[%c0_19, %c0_20, %c0_21] : memref<1x128x256xf32, #tpu.memory_space<vmem>>, vector<1x128x256xf32>
    %40 = vector.shape_cast %39 : vector<1x128x256xf32> to vector<128x256xf32>
    %41 = vector.shape_cast %38 : vector<128x256xf32> to vector<1x128x256xf32>
    tpu.vector_store %arg7[%c0_19, %c0_20, %c0_21], %41 {strides = array<i32>} : memref<1x128x256xf32, #tpu.memory_space<vmem>>, vector<1x128x256xf32>,
    return
  }
  func.func @transform_0(%arg0: i32, %arg1: i32) -> (i32, i32, i32) {
    %c0_i32 = arith.constant 0 : i32
    %c0_i32_0 = arith.constant 0 : i32
    return %arg0, %c0_i32, %arg1 : i32, i32, i32
  }
  func.func @transform_1(%arg0: i32, %arg1: i32) -> (i32, i32) {
    %c0_i32 = arith.constant 0 : i32
    %c0_i32_0 = arith.constant 0 : i32
    %c0_i32_1 = arith.constant 0 : i32
    return %c0_i32, %c0_i32_0 : i32, i32
  }
  func.func @transform_2(%arg0: i32, %arg1: i32) -> (i32, i32) {
    %c0_i32 = arith.constant 0 : i32
    %c0_i32_0 = arith.constant 0 : i32
    %c0_i32_1 = arith.constant 0 : i32
    return %c0_i32, %c0_i32_0 : i32, i32
  }
  func.func @transform_3(%arg0: i32, %arg1: i32) -> (i32, i32) {
    %c0_i32 = arith.constant 0 : i32
    %c0_i32_0 = arith.constant 0 : i32
    %c0_i32_1 = arith.constant 0 : i32
    return %c0_i32, %c0_i32_0 : i32, i32
  }
  func.func @transform_4(%arg0: i32, %arg1: i32) -> (i32, i32) {
    %c0_i32 = arith.constant 0 : i32
    %c0_i32_0 = arith.constant 0 : i32
    %c0_i32_1 = arith.constant 0 : i32
    return %c0_i32, %c0_i32_0 : i32, i32
  }
  func.func @transform_5(%arg0: i32, %arg1: i32) -> (i32, i32, i32) {
    %c0_i32 = arith.constant 0 : i32
    %c0_i32_0 = arith.constant 0 : i32
    return %arg0, %c0_i32, %arg1 : i32, i32, i32
  }
}

</mosaic_0001>

<bundles_post_ra>
// kernel: transformer_forward.1
= control target key start
LH: loop header
LB: loop body
LE: loop exit
PB: predicated region body
PF: predicated region fallthrough
CT: control target
= control target key end

     0   :  { %s3475_s18 = smov 0   ;;  %s3477_s19 = smov 0   ;;  %s5477_s0 = inlined_call_operand.vmem [shape: f32[2,128,256], index: 0, kind: input, shape index: {}]   ;;  %s5478_s1 = inlined_call_operand.vmem [shape: bf16[512,128], index: 1, kind: input, shape index: {}]   ;;  %s5479_s2 = inlined_call_operand.vmem [shape: f32[512,1], index: 2, kind: input, shape index: {}]   ;;  %s5480_s3 = inlined_call_operand.vmem [shape: bf16[128,512], index: 3, kind: input, shape index: {}]   ;;  %s5481_s4 = inlined_call_operand.vmem [shape: f32[128,1], index: 4, kind: input, shape index: {}]   ;;  %s5482_s5 = inlined_call_operand.vmem [shape: f32[2,128,256], index: 5, kind: output, shape index: {}]  }
   0x1   :  { %s3479_s20 = smov 0  }
   0x2 LB: > { %s27_s21 = sadd.s32 1, %s3438_s19  ;;  %p2868_p0 = scmp.ge.s32.totalorder %s3442_s20, 1  ;;  %s3442_s20 = sphi %s3479_s20, %s15_s20   ;;  %s3438_s19 = sphi %s3477_s19, %s5632_s19   ;;  %s3434_s18 = sphi %s3475_s18, %s5631_s18  }
   0x3   : > { %p29_p1 = scmp.ge.s32.totalorder %s27_s21, 2  ;;  %p208_p2 = scmp.lt.s32.totalorder %s3442_s20, 3 }
   0x5   : > { %s5634_s21 = smov (%p29_p1, %s27_s21), 0  ;;  %p209_p3 = pnand %p2868_p0, %p208_p2 }
   0x7   : > { %212 = sbr.rel (%p209_p3) target bundleno = 911 (0x38f), region = 40 }
   0xe   : > { %p245_p4 = scmp.lt.s32.totalorder %s3434_s18, 1  ;;  %v3444_v57 = vmov 0  }
   0xf   : > { %1174 = vmatprep.mubr.bf16.mxu0 %v3444_v57  ;;  %3046 = vset.pattern.permute.xlu0 %v3444_v57 }
  0x10   : > { %s5636_s18 = smov (!%p245_p4, %s3434_s18), 1  ;;  %1414 = vmatprep.mubr.bf16.mxu1 %v3444_v57  ;;  %3047 = vset.pattern.permute.xlu1 %v3444_v57 }
  0x11   : > { %s2939_s22 = sshll.u32 %s5636_s18, 8 }
  0x12   : > { %s3501_s25 = scalar_lea.vmem %s5477_s0, %s2939_s22  ;;  %s5402_s6 = scalar_lea.vmem %s5482_s5, %s2939_s22 }
  0x13   : > { %v3504_v0 = vld [vmem:[%s3501_s25 + $0x8] sm:$0xff]  ;;  %v3507_v1 = vld [vmem:[%s3501_s25 + $0x18] sm:$0xff]  ;;  %v3523_v8 = vld [vmem:[%s3501_s25] sm:$0xff] }
  0x14   : > { %v3510_v2 = vld [vmem:[%s3501_s25 + $0x28] sm:$0xff]  ;;  %v318_v3 = vadd.f32 %v3507_v1, %v3504_v0  ;;  %v3515_v4 = vld [vmem:[%s3501_s25 + $0x38] sm:$0xff]  ;;  %v3526_v9 = vld [vmem:[%s3501_s25 + $0x10] sm:$0xff] }
  0x15   : > { %v3519_v6 = vld [vmem:[%s3501_s25 + $0x48] sm:$0xff]  ;;  %v3529_v10 = vld [vmem:[%s3501_s25 + $0x58] sm:$0xff]  ;;  %v3532_v11 = vld [vmem:[%s3501_s25 + $0x20] sm:$0xff]  ;;  %v297_v12 = vadd.f32 %v3526_v9, %v3523_v8 }
  0x16   : > { %v319_v5 = vadd.f32 %v318_v3, %v3510_v2  ;;  %v3538_v14 = vld [vmem:[%s3501_s25 + $0x30] sm:$0xff]  ;;  %v3541_v15 = vld [vmem:[%s3501_s25 + $0x68] sm:$0xff]  ;;  %v3545_v17 = vld [vmem:[%s3501_s25 + $0x78] sm:$0xff] }
  0x17   : > { %v298_v16 = vadd.f32 %v297_v12, %v3532_v11  ;;  %v3549_v19 = vld [vmem:[%s3501_s25 + $0x40] sm:$0xff]  ;;  %v3552_v20 = vld [vmem:[%s3501_s25 + $0x88] sm:$0xff]  ;;  %v3555_v21 = vld [vmem:[%s3501_s25 + $0x50] sm:$0xff] }
  0x18   : > { %v320_v7 = vadd.f32 %v319_v5, %v3515_v4  ;;  %v3560_v24 = vld [vmem:[%s3501_s25 + $0x60] sm:$0xff]  ;;  %v3563_v25 = vld [vmem:[%s3501_s25 + $0x98] sm:$0xff]  ;;  %v3568_v28 = vld [vmem:[%s3501_s25 + $0x70] sm:$0xff] }
  0x19   : > { %v299_v22 = vadd.f32 %v298_v16, %v3538_v14  ;;  %v3571_v29 = vld [vmem:[%s3501_s25 + $0xa8] sm:$0xff]  ;;  %v3576_v32 = vld [vmem:[%s3501_s25 + $0x80] sm:$0xff]  ;;  %v3579_v33 = vld [vmem:[%s3501_s25 + $0xb8] sm:$0xff] }
  0x1a   : > { %v321_v13 = vadd.f32 %v320_v7, %v3519_v6  ;;  %v3584_v36 = vld [vmem:[%s3501_s25 + $0x90] sm:$0xff]  ;;  %v3587_v37 = vld [vmem:[%s3501_s25 + $0xc8] sm:$0xff]  ;;  %v3592_v40 = vld [vmem:[%s3501_s25 + $0xa0] sm:$0xff] }
  0x1b   : > { %v300_v26 = vadd.f32 %v299_v22, %v3549_v19  ;;  %v3595_v41 = vld [vmem:[%s3501_s25 + $0xd8] sm:$0xff]  ;;  %v3600_v44 = vld [vmem:[%s3501_s25 + $0xb0] sm:$0xff]  ;;  %v3603_v45 = vld [vmem:[%s3501_s25 + $0xe8] sm:$0xff] }
  0x1c   : > { %v322_v18 = vadd.f32 %v321_v13, %v3529_v10  ;;  %v3608_v48 = vld [vmem:[%s3501_s25 + $0xc0] sm:$0xff]  ;;  %v3611_v49 = vld [vmem:[%s3501_s25 + $0xf8] sm:$0xff]  ;;  %v3616_v52 = vld [vmem:[%s3501_s25 + $0xd0] sm:$0xff] }
  0x1d   : > { %v301_v30 = vadd.f32 %v300_v26, %v3555_v21  ;;  %v3621_v55 = vld [vmem:[%s3501_s25 + $0xe0] sm:$0xff]  ;;  %v3631_v61 = vld [vmem:[%s3501_s25 + $0xf0] sm:$0xff] }
  0x1e   : > { %v323_v23 = vadd.f32 %v322_v18, %v3541_v15 }
  0x1f   : > { %v302_v34 = vadd.f32 %v301_v30, %v3560_v24 }
  0x20   : > { %v324_v27 = vadd.f32 %v323_v23, %v3545_v17 }
  0x21   : > { %v303_v38 = vadd.f32 %v302_v34, %v3568_v28  ;;  %v568_v34 = vld [vmem:[%s5479_s2 + $0x10] sm:$0xff] }
  0x22   : > { %v325_v31 = vadd.f32 %v324_v27, %v3552_v20  ;;  %642 = vperm.xlu1 %3047, %v568_v34  }
  0x23   : > { %v304_v42 = vadd.f32 %v303_v38, %v3576_v32 }
  0x24   : > { %v326_v35 = vadd.f32 %v325_v31, %v3563_v25  ;;  %v566_v31 = vld [vmem:[%s5479_s2] sm:$0xff] }
  0x25   : > { %v305_v46 = vadd.f32 %v304_v42, %v3584_v36  ;;  %632 = vperm.xlu0 %3046, %v566_v31  }
  0x26   : > { %v327_v39 = vadd.f32 %v326_v35, %v3571_v29 }
  0x27   : > { %v306_v50 = vadd.f32 %v305_v46, %v3592_v40 }
  0x28   : > { %v328_v43 = vadd.f32 %v327_v39, %v3579_v33 }
  0x29   : > { %v307_v53 = vadd.f32 %v306_v50, %v3600_v44 }
  0x2a   : > { %v329_v47 = vadd.f32 %v328_v43, %v3587_v37 }
  0x2b   : > { %v308_v56 = vadd.f32 %v307_v53, %v3608_v48 }
  0x2c   : > { %v330_v51 = vadd.f32 %v329_v47, %v3595_v41 }
  0x2d   : > { %v309_v59 = vadd.f32 %v308_v56, %v3616_v52 }
  0x2e   : > { %v331_v54 = vadd.f32 %v330_v51, %v3603_v45  ;;  %v569_v51 = vld [vmem:[%s5479_s2 + $0x18] sm:$0xff] }
  0x2f   : > { %v310_v62 = vadd.f32 %v309_v59, %v3621_v55  ;;  %647 = vperm.xlu1 %3047, %v569_v51  }
  0x30   : > { %v332_v58 = vadd.f32 %v331_v54, %v3611_v49 }
  0x31   : > { %v311_v3 = vadd.f32 %v310_v62, %v3631_v61  ;;  %v572_v62 = vld [vmem:[%s5479_s2 + $0x30] sm:$0xff] }
  0x32   : > { %v333_v60 = vrot.slane %v332_v58, 4 }
  0x33   : > { %v312_v7 = vrot.slane %v311_v3, 4 }
  0x34   : > { %v334_v63 = vadd.f32 %v333_v60, %v332_v58  ;;  %v571_v58 = vld [vmem:[%s5479_s2 + $0x28] sm:$0xff] }
  0x35   : > { %v313_v13 = vadd.f32 %v312_v7, %v311_v3  ;;  %657 = vperm.xlu1 %3047, %v571_v58  }
  0x36   : > { %v335_v5 = vrot.slane %v334_v63, 2 }
  0x37   : > { %v314_v22 = vrot.slane %v313_v13, 2 }
  0x38   : > { %v336_v12 = vadd.f32 %v335_v5, %v334_v63 }
  0x39   : > { %v315_v30 = vadd.f32 %v314_v22, %v313_v13 }
  0x3a   : > { %v337_v16 = vrot.slane %v336_v12, 1 }
  0x3b   : > { %v316_v42 = vrot.slane %v315_v30, 1 }
  0x3c   : > { %v338_v18 = vadd.f32 %v337_v16, %v336_v12 }
  0x3d   : > { %v317_v50 = vadd.f32 %v316_v42, %v315_v30 }
  0x3e   : > { %v3635_v23 = vmul.f32 0.0078125, %v338_v18  ;;  %v573_v18 = vld [vmem:[%s5479_s2 + $0x38] sm:$0xff] }
  0x3f   : > { %v3690_v56 = vmul.f32 0.0078125, %v317_v50  ;;  %667 = vperm.xlu1 %3047, %v573_v18  }
  0x40   : > { %v3639_v26 = vsub.f32 %v3504_v0, %v3635_v23  ;;  %v3643_v27 = vsub.f32 %v3507_v1, %v3635_v23  ;;  %v3653_v35 = vsub.f32 %v3510_v2, %v3635_v23  ;;  %v567_v0 = vld [vmem:[%s5479_s2 + $0x8] sm:$0xff]  ;;  %v3660_v1 = vsub.f32 %v3515_v4, %v3635_v23 }
  0x41   : > { %v3668_v2 = vsub.f32 %v3519_v6, %v3635_v23  ;;  %637 = vperm.xlu0 %3046, %v567_v0   ;;  %v3674_v46 = vsub.f32 %v3529_v10, %v3635_v23  ;;  %v570_v6 = vld [vmem:[%s5479_s2 + $0x20] sm:$0xff]  ;;  %v3686_v53 = vsub.f32 %v3541_v15, %v3635_v23  ;;  %v3697_v59 = vsub.f32 %v3545_v17, %v3635_v23  ;;  %v575_v0 = vld [vmem:[%s5479_s2 + $0x48] sm:$0xff] }
  0x42   : > { %v375_v38 = vmul.f32 %v3639_v26, %v3639_v26  ;;  %v377_v39 = vmul.f32 %v3643_v27, %v3643_v27  ;;  %v379_v43 = vmul.f32 %v3653_v35, %v3653_v35  ;;  %v381_v4 = vmul.f32 %v3660_v1, %v3660_v1 }
  0x43   : > { %v383_v10 = vmul.f32 %v3668_v2, %v3668_v2  ;;  %v385_v15 = vmul.f32 %v3674_v46, %v3674_v46  ;;  %v3706_v63 = vsub.f32 %v3523_v8, %v3690_v56  ;;  %v3710_v3 = vsub.f32 %v3526_v9, %v3690_v56  ;;  %677 = vperm.xlu1 %3047, %v575_v0  }
  0x44   : > { %v427_v47 = vadd.f32 %v377_v39, %v375_v38  ;;  %v3714_v17 = vsub.f32 %v3552_v20, %v3635_v23  ;;  %v387_v5 = vmul.f32 %v3686_v53, %v3686_v53  ;;  %v3720_v12 = vsub.f32 %v3532_v11, %v3690_v56 }
  0x45   : > { %652 = vperm.xlu0 %3046, %v570_v6   ;;  %v3724_v8 = vsub.f32 %v3563_v25, %v3635_v23  ;;  %v389_v9 = vmul.f32 %v3697_v59, %v3697_v59  ;;  %v3730_v20 = vsub.f32 %v3538_v14, %v3690_v56  ;;  %v374_v16 = vmul.f32 %v3706_v63, %v3706_v63  ;;  %v574_v25 = vld [vmem:[%s5479_s2 + $0x40] sm:$0xff] }
  0x46   : > { %v428_v54 = vadd.f32 %v427_v47, %v379_v43  ;;  %v376_v11 = vmul.f32 %v3710_v3, %v3710_v3  ;;  %v3744_v22 = vsub.f32 %v3571_v29, %v3635_v23  ;;  %v391_v14 = vmul.f32 %v3714_v17, %v3714_v17 }
  0x47   : > { %v3750_v31 = vsub.f32 %v3549_v19, %v3690_v56  ;;  %v378_v34 = vmul.f32 %v3720_v12, %v3720_v12  ;;  %v3759_v29 = vsub.f32 %v3579_v33, %v3635_v23  ;;  %v393_v38 = vmul.f32 %v3724_v8, %v3724_v8  ;;  %v576_v19 = vld [vmem:[%s5479_s2 + $0x50] sm:$0xff] }
  0x48   : > { %v429_v60 = vadd.f32 %v428_v54, %v381_v4  ;;  %v3768_v42 = vsub.f32 %v3555_v21, %v3690_v56  ;;  %v380_v43 = vmul.f32 %v3730_v20, %v3730_v20  ;;  %v406_v4 = vadd.f32 %v376_v11, %v374_v16  ;;  %v579_v16 = vld [vmem:[%s5479_s2 + $0x68] sm:$0xff] }
  0x49   : > { %662 = vperm.xlu0 %3046, %v572_v62   ;;  %v3774_v33 = vsub.f32 %v3587_v37, %v3635_v23  ;;  %v395_v47 = vmul.f32 %v3744_v22, %v3744_v22  ;;  %v3780_v51 = vsub.f32 %v3560_v24, %v3690_v56  ;;  %v382_v21 = vmul.f32 %v3750_v31, %v3750_v31 }
  0x4a   : > { %v430_v7 = vadd.f32 %v429_v60, %v383_v10  ;;  %v407_v6 = vadd.f32 %v406_v4, %v378_v34  ;;  %v3786_v10 = vsub.f32 %v3595_v41, %v3635_v23  ;;  %v397_v37 = vmul.f32 %v3759_v29, %v3759_v29  ;;  %v577_v60 = vld [vmem:[%s5479_s2 + $0x58] sm:$0xff]  ;;  %v578_v41 = vld [vmem:[%s5479_s2 + $0x60] sm:$0xff] }
  0x4b   : > { %v3792_v58 = vsub.f32 %v3568_v28, %v3690_v56  ;;  %v384_v24 = vmul.f32 %v3768_v42, %v3768_v42  ;;  %v3804_v62 = vsub.f32 %v3603_v45, %v3635_v23  ;;  %v399_v28 = vmul.f32 %v3774_v33, %v3774_v33  ;;  %687 = vperm.xlu1 %3047, %v577_v60  }
  0x4c   : > { %v431_v13 = vadd.f32 %v430_v7, %v385_v15  ;;  %v408_v15 = vadd.f32 %v407_v6, %v380_v43  ;;  %v3810_v7 = vsub.f32 %v3576_v32, %v3690_v56  ;;  %v3819_v45 = vsub.f32 %v3611_v49, %v3635_v23  ;;  %v580_v32 = vld [vmem:[%s5479_s2 + $0x70] sm:$0xff] }
  0x4d   : > { %672 = vperm.xlu0 %3046, %v574_v25   ;;  %v401_v11 = vmul.f32 %v3786_v10, %v3786_v10  ;;  %v3828_v25 = vsub.f32 %v3584_v36, %v3690_v56  ;;  %v403_v49 = vmul.f32 %v3804_v62, %v3804_v62  ;;  %v3836_v34 = vsub.f32 %v3592_v40, %v3690_v56  ;;  %v581_v40 = vld [vmem:[%s5479_s2 + $0x78] sm:$0xff] }
  0x4e   : > { %v432_v30 = vadd.f32 %v431_v13, %v387_v5  ;;  %v409_v13 = vadd.f32 %v408_v15, %v382_v21  ;;  %v390_v0 = vmul.f32 %v3810_v7, %v3810_v7  ;;  %v405_v36 = vmul.f32 %v3819_v45, %v3819_v45 }
  0x4f   : > { %697 = vperm.xlu1 %3047, %v579_v16   ;;  %v392_v43 = vmul.f32 %v3828_v25, %v3828_v25  ;;  %v3856_v21 = vsub.f32 %v3608_v48, %v3690_v56  ;;  %v3868_v15 = vsub.f32 %v3616_v52, %v3690_v56  ;;  %v3880_v52 = vsub.f32 %v3631_v61, %v3690_v56  ;;  %v587_v61 = vld [vmem:[%s5479_s2 + $0xa8] sm:$0xff] }
  0x50   : > { %v433_v39 = vadd.f32 %v432_v30, %v389_v9  ;;  %v386_v9 = vmul.f32 %v3780_v51, %v3780_v51  ;;  %v410_v30 = vadd.f32 %v409_v13, %v384_v24  ;;  %v584_v24 = vld [vmem:[%s5479_s2 + $0x90] sm:$0xff] }
  0x51   : > { %682 = vperm.xlu0 %3046, %v576_v19   ;;  %v3844_v19 = vsub.f32 %v3600_v44, %v3690_v56  ;;  %v394_v44 = vmul.f32 %v3836_v34, %v3836_v34  ;;  %v400_v16 = vmul.f32 %v3868_v15, %v3868_v15 }
  0x52   : > { %v434_v50 = vadd.f32 %v433_v39, %v391_v14  ;;  %v388_v14 = vmul.f32 %v3792_v58, %v3792_v58 }
  0x53   : > { %707 = vperm.xlu1 %3047, %v581_v40   ;;  %v396_v48 = vmul.f32 %v3844_v19, %v3844_v19  ;;  %v590_v40 = vld [vmem:[%s5479_s2 + $0xc0] sm:$0xff] }
  0x54   : > { %v435_v54 = vadd.f32 %v434_v50, %v393_v38  ;;  %v411_v38 = vadd.f32 %v410_v30, %v386_v9 }
  0x55   : > { %692 = vperm.xlu0 %3046, %v578_v41  }
  0x56   : > { %v436_v5 = vadd.f32 %v435_v54, %v395_v47  ;;  %v412_v4 = vadd.f32 %v411_v38, %v388_v14  ;;  %v582_v47 = vld [vmem:[%s5479_s2 + $0x80] sm:$0xff] }
  0x58   : > { %v437_v18 = vadd.f32 %v436_v5, %v397_v37  ;;  %v413_v6 = vadd.f32 %v412_v4, %v390_v0  ;;  %v583_v37 = vld [vmem:[%s5479_s2 + $0x88] sm:$0xff]  ;;  %v398_v5 = vmul.f32 %v3856_v21, %v3856_v21  ;;  %v589_v4 = vld [vmem:[%s5479_s2 + $0xb8] sm:$0xff] }
  0x59   : > { %702 = vperm.xlu0 %3046, %v580_v32   ;;  %717 = vperm.xlu1 %3047, %v583_v37   ;;  %v592_v37 = vld [vmem:[%s5479_s2 + $0xd0] sm:$0xff] }
  0x5a   : > { %v438_v23 = vadd.f32 %v437_v18, %v399_v28  ;;  %v414_v60 = vadd.f32 %v413_v6, %v392_v43  ;;  %v3874_v28 = vsub.f32 %v3621_v55, %v3690_v56  ;;  %v585_v18 = vld [vmem:[%s5479_s2 + $0x98] sm:$0xff]  ;;  %v586_v55 = vld [vmem:[%s5479_s2 + $0xa0] sm:$0xff] }
  0x5c   : > { %v439_v39 = vadd.f32 %v438_v23, %v401_v11  ;;  %v415_v9 = vadd.f32 %v414_v60, %v394_v44  ;;  %v402_v14 = vmul.f32 %v3874_v28, %v3874_v28  ;;  %v404_v23 = vmul.f32 %v3880_v52, %v3880_v52  ;;  %v591_v44 = vld [vmem:[%s5479_s2 + $0xc8] sm:$0xff]  ;;  %v593_v60 = vld [vmem:[%s5479_s2 + $0xd8] sm:$0xff] }
  0x5d   : > { %712 = vperm.xlu0 %3046, %v582_v47   ;;  %727 = vperm.xlu1 %3047, %v585_v18  }
  0x5e   : > { %v440_v50 = vadd.f32 %v439_v39, %v403_v49  ;;  %v416_v11 = vadd.f32 %v415_v9, %v396_v48  ;;  %v588_v49 = vld [vmem:[%s5479_s2 + $0xb0] sm:$0xff]  ;;  %v595_v9 = vld [vmem:[%s5479_s2 + $0xe8] sm:$0xff] }
  0x60   : > { %v441_v54 = vadd.f32 %v440_v50, %v405_v36  ;;  %v417_v30 = vadd.f32 %v416_v11, %v398_v5 }
  0x61   : > { %722 = vperm.xlu0 %3046, %v584_v24   ;;  %737 = vperm.xlu1 %3047, %v587_v61   ;;  %v597_v61 = vld [vmem:[%s5479_s2 + $0xf8] sm:$0xff] }
  0x62   : > { %v442_v41 = vrot.slane %v441_v54, 4  ;;  %v418_v0 = vadd.f32 %v417_v30, %v400_v16 }
  0x64   : > { %v443_v13 = vadd.f32 %v442_v41, %v441_v54  ;;  %v419_v36 = vadd.f32 %v418_v0, %v402_v14  ;;  %v594_v41 = vld [vmem:[%s5479_s2 + $0xe0] sm:$0xff] }
  0x65   : > { %732 = vperm.xlu0 %3046, %v586_v55   ;;  %747 = vperm.xlu1 %3047, %v589_v4  }
  0x66   : > { %v444_v32 = vrot.slane %v443_v13, 2  ;;  %v420_v43 = vadd.f32 %v419_v36, %v404_v23  ;;  %v599_v36 = vld [vmem:[%s5479_s2 + $0x108] sm:$0xff] }
  0x68   : > { %v445_v56 = vadd.f32 %v444_v32, %v443_v13  ;;  %v421_v50 = vrot.slane %v420_v43, 4  ;;  %v596_v13 = vld [vmem:[%s5479_s2 + $0xf0] sm:$0xff] }
  0x69   : > { %742 = vperm.xlu0 %3046, %v588_v49   ;;  %757 = vperm.xlu1 %3047, %v591_v44  }
  0x6a   : > { %v446_v38 = vrot.slane %v445_v56, 1  ;;  %v422_v54 = vadd.f32 %v421_v50, %v420_v43 }
  0x6c   : > { %v447_v39 = vadd.f32 %v446_v38, %v445_v56  ;;  %v423_v24 = vrot.slane %v422_v54, 2  ;;  %v598_v56 = vld [vmem:[%s5479_s2 + $0x100] sm:$0xff] }
  0x6d   : > { %752 = vperm.xlu0 %3046, %v590_v40   ;;  %767 = vperm.xlu1 %3047, %v593_v60   ;;  %v605_v60 = vld [vmem:[%s5479_s2 + $0x138] sm:$0xff] }
  0x6e   : > { %v449_v47 = vmul.f32 0.0078125, %v447_v39  ;;  %v424_v48 = vadd.f32 %v423_v24, %v422_v54 }
  0x70   : > { %v451_v6 = vadd.f32 1e-05, %v449_v47  ;;  %v425_v5 = vrot.slane %v424_v48, 1 }
  0x71   : > { %762 = vperm.xlu0 %3046, %v592_v37   ;;  %777 = vperm.xlu1 %3047, %v595_v9  }
  0x72   : > { %3128 = vrsqrt.f32 %v451_v6  ;;  %v426_v16 = vadd.f32 %v425_v5, %v424_v48  ;;  %v608_v5 = vld [vmem:[%s5479_s2 + $0x150] sm:$0xff] }
  0x74   : > { %v448_v11 = vmul.f32 0.0078125, %v426_v16  ;;  %v610_v16 = vld [vmem:[%s5479_s2 + $0x160] sm:$0xff] }
  0x75   : > { %772 = vperm.xlu0 %3046, %v594_v41   ;;  %787 = vperm.xlu1 %3047, %v597_v61  }
  0x76   : > { %v450_v14 = vadd.f32 1e-05, %v448_v11 }
  0x78   : > { %3130 = vrsqrt.f32 %v450_v14  ;;  %v613_v14 = vld [vmem:[%s5479_s2 + $0x178] sm:$0xff] }
  0x79   : > { %782 = vperm.xlu0 %3046, %v596_v13   ;;  %797 = vperm.xlu1 %3047, %v599_v36   ;;  %v609_v13 = vld [vmem:[%s5479_s2 + $0x158] sm:$0xff] }
  0x7a   : > { %v621_v36 = vld [vmem:[%s5479_s2 + $0x1b8] sm:$0xff] }
  0x7c   : > { %v3129_v18 = vpop.eup %3128 }
  0x7d   : > { %v455_v55 = vmul.f32 %v3129_v18, %v3639_v26  ;;  %v457_v32 = vmul.f32 %v3129_v18, %v3643_v27  ;;  %v459_v30 = vmul.f32 %v3129_v18, %v3653_v35  ;;  %v461_v49 = vmul.f32 %v3129_v18, %v3660_v1  ;;  %792 = vperm.xlu0 %3046, %v598_v56   ;;  %v615_v56 = vld [vmem:[%s5479_s2 + $0x188] sm:$0xff] }
  0x7e   : > { %v463_v23 = vmul.f32 %v3129_v18, %v3668_v2  ;;  %v465_v0 = vmul.f32 %v3129_v18, %v3674_v46  ;;  %v467_v26 = vmul.f32 %v3129_v18, %v3686_v53  ;;  %v469_v35 = vmul.f32 %v3129_v18, %v3697_v59  ;;  %v600_v53 = vld [vmem:[%s5479_s2 + $0x110] sm:$0xff] }
  0x7f   : > { %v551_v27 = vpack.c.bf16 %v457_v32, %v455_v55  ;;  %v471_v38 = vmul.f32 %v3129_v18, %v3714_v17  ;;  %v553_v39 = vpack.c.bf16 %v461_v49, %v459_v30  ;;  %v473_v2 = vmul.f32 %v3129_v18, %v3724_v8  ;;  %v612_v55 = vld [vmem:[%s5479_s2 + $0x170] sm:$0xff]  ;;  %v614_v30 = vld [vmem:[%s5479_s2 + $0x180] sm:$0xff] }
  0x80   : > { %v555_v1 = vpack.c.bf16 %v465_v0, %v463_v23  ;;  %v475_v46 = vmul.f32 %v3129_v18, %v3744_v22  ;;  %v557_v43 = vpack.c.bf16 %v469_v35, %v467_v26  ;;  %v477_v59 = vmul.f32 %v3129_v18, %v3759_v29  ;;  %v601_v29 = vld [vmem:[%s5479_s2 + $0x118] sm:$0xff]  ;;  %v616_v49 = vld [vmem:[%s5479_s2 + $0x190] sm:$0xff]  ;;  %v618_v26 = vld [vmem:[%s5479_s2 + $0x1a0] sm:$0xff] }
  0x81   : > { %1142 = vmatprep.subr.bf16.mxu0 %v551_v27  ;;  %2941 = vmatprep.subr.bf16.mxu1 %v551_v27  ;;  %v479_v17 = vmul.f32 %v3129_v18, %v3774_v33  ;;  %v3949_v4 = vpack.c.bf16 %v473_v2, %v471_v38  ;;  %v481_v40 = vmul.f32 %v3129_v18, %v3786_v10  ;;  %v602_v33 = vld [vmem:[%s5479_s2 + $0x120] sm:$0xff]  ;;  %v603_v10 = vld [vmem:[%s5479_s2 + $0x128] sm:$0xff]  ;;  %v617_v0 = vld [vmem:[%s5479_s2 + $0x198] sm:$0xff] }
  0x82   : > { %v483_v47 = vmul.f32 %v3129_v18, %v3804_v62  ;;  %v485_v8 = vmul.f32 %v3129_v18, %v3819_v45  ;;  %v3954_v22 = vpack.c.bf16 %v477_v59, %v475_v46  ;;  %802 = vperm.xlu0 %3046, %v600_v53   ;;  %807 = vperm.xlu1 %3047, %v601_v29   ;;  %v604_v62 = vld [vmem:[%s5479_s2 + $0x130] sm:$0xff]  ;;  %v3972_v45 = vpop.eup %3130  ;;  %v611_v18 = vld [vmem:[%s5479_s2 + $0x168] sm:$0xff]  ;;  %v3051_v27 = vld [vmem:[%s5478_s1 + $0xc0] sm:$0xff]  }
  0x83   : > { %v3956_v50 = vpack.c.bf16 %v481_v40, %v479_v17  ;;  %v454_v6 = vmul.f32 %v3972_v45, %v3706_v63  ;;  %v456_v37 = vmul.f32 %v3972_v45, %v3710_v3  ;;  %v458_v54 = vmul.f32 %v3972_v45, %v3720_v12  ;;  %v606_v63 = vld [vmem:[%s5479_s2 + $0x140] sm:$0xff]  ;;  %v619_v35 = vld [vmem:[%s5479_s2 + $0x1a8] sm:$0xff]  ;;  %v620_v38 = vld [vmem:[%s5479_s2 + $0x1b0] sm:$0xff] }
  0x84   : > { %v3958_v44 = vpack.c.bf16 %v485_v8, %v483_v47  ;;  %v460_v24 = vmul.f32 %v3972_v45, %v3730_v20  ;;  %v462_v3 = vmul.f32 %v3972_v45, %v3750_v31  ;;  %v464_v12 = vmul.f32 %v3972_v45, %v3768_v42  ;;  %v607_v20 = vld [vmem:[%s5479_s2 + $0x148] sm:$0xff]  ;;  %v624_v53 = vld [vmem:[%s5479_s2 + $0x1d0] sm:$0xff]  ;;  %v626_v59 = vld [vmem:[%s5479_s2 + $0x1e0] sm:$0xff] }
  0x85   : > { %v550_v48 = vpack.c.bf16 %v456_v37, %v454_v6  ;;  %v466_v31 = vmul.f32 %v3972_v45, %v3780_v51  ;;  %v468_v42 = vmul.f32 %v3972_v45, %v3792_v58  ;;  %v470_v51 = vmul.f32 %v3972_v45, %v3810_v7  ;;  %v3053_v2 = vld [vmem:[%s5478_s1 + $0xc8] sm:$0xff]   ;;  %v3050_v17 = vld [vmem:[%s5478_s1 + $0x10] sm:$0xff]   ;;  %v629_v8 = vld [vmem:[%s5479_s2 + $0x1f8] sm:$0xff] }
  0x86   : > { %812 = vperm.xlu0 %3046, %v602_v33   ;;  %817 = vperm.xlu1 %3047, %v603_v10   ;;  %v552_v41 = vpack.c.bf16 %v460_v24, %v458_v54  ;;  %v554_v9 = vpack.c.bf16 %v464_v12, %v462_v3  ;;  %v472_v58 = vmul.f32 %v3972_v45, %v3828_v25  ;;  %v623_v46 = vld [vmem:[%s5479_s2 + $0x1c8] sm:$0xff]  ;;  %v628_v47 = vld [vmem:[%s5479_s2 + $0x1f0] sm:$0xff]  ;;  %v2234_v10 = vld [vmem:[%s5481_s4 + $0x18] sm:$0xff] }
  0x87   : > { %1143 = vmatpush1.bf16.msra.mxu0 %v550_v48  ;;  %2949 = vmatpush1.bf16.msra.mxu1 %v550_v48  ;;  %v556_v11 = vpack.c.bf16 %v468_v42, %v466_v31  ;;  %v474_v7 = vmul.f32 %v3972_v45, %v3836_v34  ;;  %v476_v25 = vmul.f32 %v3972_v45, %v3844_v19  ;;  %v627_v40 = vld [vmem:[%s5479_s2 + $0x1e8] sm:$0xff]  ;;  %v2233_v33 = vld [vmem:[%s5481_s4 + $0x10] sm:$0xff]  ;;  %v3059_v6 = vld [vmem:[%s5478_s1 + $0xe0] sm:$0xff]  }
  0x88   : > { %1144 = vmatprep.subr.bf16.mxu0 %v553_v39  ;;  %2942 = vmatprep.subr.bf16.mxu1 %v553_v39  ;;  %v558_v32 = vpack.c.bf16 %v472_v58, %v470_v51  ;;  %v478_v19 = vmul.f32 %v3972_v45, %v3856_v21  ;;  %v480_v61 = vmul.f32 %v3972_v45, %v3868_v15  ;;  %v622_v39 = vld [vmem:[%s5479_s2 + $0x1c0] sm:$0xff]  ;;  %v2232_v29 = vld [vmem:[%s5481_s4 + $0x8] sm:$0xff]  ;;  %v2237_v54 = vld [vmem:[%s5481_s4 + $0x30] sm:$0xff] }
  0x89   : > { %v560_v34 = vpack.c.bf16 %v476_v25, %v474_v7  ;;  %v482_v15 = vmul.f32 %v3972_v45, %v3874_v28  ;;  %v484_v23 = vmul.f32 %v3972_v45, %v3880_v52  ;;  %v3048_v52 = vld [vmem:[%s5478_s1] sm:$0xff]   ;;  %v2236_v37 = vld [vmem:[%s5481_s4 + $0x28] sm:$0xff]  ;;  %v2238_v24 = vld [vmem:[%s5481_s4 + $0x38] sm:$0xff] }
  0x8a   : > { %822 = vperm.xlu0 %3046, %v604_v62   ;;  %827 = vperm.xlu1 %3047, %v605_v60   ;;  %v562_v21 = vpack.c.bf16 %v480_v61, %v478_v19  ;;  %v2235_v62 = vld [vmem:[%s5481_s4 + $0x20] sm:$0xff]  ;;  %v3056_v60 = vld [vmem:[%s5478_s1 + $0x28] sm:$0xff]   ;;  %v2241_v3 = vld [vmem:[%s5481_s4 + $0x50] sm:$0xff] }
  0x8b   : > { %1145 = vmatpush1.bf16.msra.mxu0 %v552_v41  ;;  %2950 = vmatpush1.bf16.msra.mxu1 %v552_v41  ;;  %v564_v28 = vpack.c.bf16 %v484_v23, %v482_v15  ;;  %v3054_v45 = vld [vmem:[%s5478_s1 + $0x20] sm:$0xff]   ;;  %v2240_v41 = vld [vmem:[%s5481_s4 + $0x48] sm:$0xff]  ;;  %v2242_v12 = vld [vmem:[%s5481_s4 + $0x58] sm:$0xff] }
  0x8c   : > { %1146 = vmatprep.subr.bf16.mxu0 %v555_v1  ;;  %2943 = vmatprep.subr.bf16.mxu1 %v555_v1  ;;  %v3049_v1 = vld [vmem:[%s5478_s1 + $0x8] sm:$0xff]   ;;  %v2239_v48 = vld [vmem:[%s5481_s4 + $0x40] sm:$0xff]  ;;  %v2245_v42 = vld [vmem:[%s5481_s4 + $0x70] sm:$0xff] }
  0x8d   : > { %v2244_v31 = vld [vmem:[%s5481_s4 + $0x68] sm:$0xff]  ;;  %v3062_v51 = vld [vmem:[%s5478_s1 + $0x40] sm:$0xff]   ;;  %v3066_v7 = vld [vmem:[%s5478_s1 + $0x50] sm:$0xff]  }
  0x8e   : > { %832 = vperm.xlu0 %3046, %v606_v63   ;;  %837 = vperm.xlu1 %3047, %v607_v20   ;;  %v3061_v63 = vld [vmem:[%s5478_s1 + $0xe8] sm:$0xff]   ;;  %v2243_v20 = vld [vmem:[%s5481_s4 + $0x60] sm:$0xff] }
  0x8f   : > { %1147 = vmatpush1.bf16.msra.mxu0 %v554_v9  ;;  %2951 = vmatpush1.bf16.msra.mxu1 %v554_v9  ;;  %v3063_v9 = vld [vmem:[%s5478_s1 + $0xf0] sm:$0xff]   ;;  %v3069_v23 = vld [vmem:[%s5478_s1 + $0x68] sm:$0xff]  }
  0x90   : > { %1148 = vmatprep.subr.bf16.mxu0 %v557_v43  ;;  %2944 = vmatprep.subr.bf16.mxu1 %v557_v43  ;;  %v625_v43 = vld [vmem:[%s5479_s2 + $0x1d8] sm:$0xff] }
  0x92   : > { %842 = vperm.xlu0 %3046, %v608_v5   ;;  %847 = vperm.xlu1 %3047, %v609_v13   ;;  %v3058_v5 = vld [vmem:[%s5478_s1 + $0x30] sm:$0xff]   ;;  %v2246_v13 = vld [vmem:[%s5481_s4 + $0x78] sm:$0xff] }
  0x93   : > { %1149 = vmatpush1.bf16.msra.mxu0 %v556_v11  ;;  %2952 = vmatpush1.bf16.msra.mxu1 %v556_v11  ;;  %v3065_v11 = vld [vmem:[%s5478_s1 + $0xf8] sm:$0xff]  }
  0x94   : > { %1150 = vmatprep.subr.bf16.mxu0 %v3949_v4  ;;  %2945 = vmatprep.subr.bf16.mxu1 %v3949_v4  ;;  %v3055_v4 = vld [vmem:[%s5478_s1 + $0xd0] sm:$0xff]  }
  0x96   : > { %852 = vperm.xlu0 %3046, %v610_v16   ;;  %857 = vperm.xlu1 %3047, %v611_v18   ;;  %v3060_v16 = vld [vmem:[%s5478_s1 + $0x38] sm:$0xff]   ;;  %v3064_v18 = vld [vmem:[%s5478_s1 + $0x48] sm:$0xff]  }
  0x97   : > { %1151 = vmatpush1.bf16.msra.mxu0 %v558_v32  ;;  %2953 = vmatpush1.bf16.msra.mxu1 %v558_v32 }
  0x98   : > { %1152 = vmatprep.subr.bf16.mxu0 %v3954_v22  ;;  %2946 = vmatprep.subr.bf16.mxu1 %v3954_v22  ;;  %v2231_v22 = vld [vmem:[%s5481_s4] sm:$0xff] }
  0x9a   : > { %862 = vperm.xlu0 %3046, %v612_v55   ;;  %867 = vperm.xlu1 %3047, %v613_v14  }
  0x9b   : > { %1153 = vmatpush1.bf16.msra.mxu0 %v560_v34  ;;  %2954 = vmatpush1.bf16.msra.mxu1 %v560_v34 }
  0x9c   : > { %1154 = vmatprep.subr.bf16.mxu0 %v3956_v50  ;;  %2947 = vmatprep.subr.bf16.mxu1 %v3956_v50  ;;  %v3052_v50 = vld [vmem:[%s5478_s1 + $0x18] sm:$0xff]  }
  0x9e   : > { %872 = vperm.xlu0 %3046, %v614_v30   ;;  %877 = vperm.xlu1 %3047, %v615_v56   ;;  %v3067_v30 = vld [vmem:[%s5478_s1 + $0x58] sm:$0xff]  }
  0x9f   : > { %1155 = vmatpush1.bf16.msra.mxu0 %v562_v21  ;;  %2955 = vmatpush1.bf16.msra.mxu1 %v562_v21 }
  0xa0   : > { %1156 = vmatprep.subr.bf16.mxu0 %v3958_v44  ;;  %2948 = vmatprep.subr.bf16.mxu1 %v3958_v44  ;;  %v3057_v44 = vld [vmem:[%s5478_s1 + $0xd8] sm:$0xff]  }
  0xa1   : > { %v4209_v55 = vpop.permute.xlu1 %642 }
  0xa2   : > { %882 = vperm.xlu0 %3046, %v616_v49   ;;  %887 = vperm.xlu1 %3047, %v617_v0   ;;  %v3068_v49 = vld [vmem:[%s5478_s1 + $0x60] sm:$0xff]  }
  0xa3   : > { %1157 = vmatpush1.bf16.msra.mxu0 %v564_v28  ;;  %2956 = vmatpush1.bf16.msra.mxu1 %v564_v28  ;;  %v3070_v28 = vld [vmem:[%s5478_s1 + $0x70] sm:$0xff]  }
  0xa4   : > { %v4204_v58 = vpop.permute.xlu0 %632 }
  0xa6   : > { %892 = vperm.xlu0 %3046, %v618_v26   ;;  %897 = vperm.xlu1 %3047, %v619_v35  }
  0xa7   : > { %1175 = vmatmul.mubr.bf16.vlgmr.msra.gmra.mrb[0].mxu0 %v3048_v52  ;;  %1415 = vmatmul.mubr.bf16.vlgmr.msra.gmra.mrb[0].mxu1 %v3051_v27 }
  0xa8   : > { %1184 = vmatprep.mubr.bf16.mxu0 %v3444_v57  ;;  %1424 = vmatprep.mubr.bf16.mxu1 %v3444_v57 }
  0xaa   : > { %902 = vperm.xlu0 %3046, %v620_v38   ;;  %907 = vperm.xlu1 %3047, %v621_v36   ;;  %v3071_v36 = vld [vmem:[%s5478_s1 + $0x78] sm:$0xff]  }
  0xae   : > { %912 = vperm.xlu0 %3046, %v622_v39   ;;  %917 = vperm.xlu1 %3047, %v623_v46   ;;  %v4217_v25 = vpop.permute.xlu1 %647 }
  0xaf   : > { %1185 = vmatmul.mubr.bf16.gmra.mrb[4].mxu0 %v3049_v1  ;;  %1425 = vmatmul.mubr.bf16.gmra.mrb[4].mxu1 %v3053_v2  ;;  %v3072_v2 = vld [vmem:[%s5478_s1 + $0x80] sm:$0xff]  }
  0xb0   : > { %1194 = vmatprep.mubr.bf16.mxu0 %v3444_v57  ;;  %1434 = vmatprep.mubr.bf16.mxu1 %v3444_v57 }
  0xb2   : > { %922 = vperm.xlu0 %3046, %v624_v53   ;;  %927 = vperm.xlu1 %3047, %v625_v43   ;;  %v3073_v43 = vld [vmem:[%s5478_s1 + $0x88] sm:$0xff]  }
  0xb4   : > { %v4225_v34 = vpop.permute.xlu1 %657 }
  0xb6   : > { %932 = vperm.xlu0 %3046, %v626_v59   ;;  %937 = vperm.xlu1 %3047, %v627_v40  }
  0xb7   : > { %1195 = vmatmul.mubr.bf16.gmra.mrb[8].mxu0 %v3050_v17  ;;  %1435 = vmatmul.mubr.bf16.gmra.mrb[8].mxu1 %v3055_v4 }
  0xb8   : > { %1204 = vmatprep.mubr.bf16.mxu0 %v3444_v57  ;;  %1444 = vmatprep.mubr.bf16.mxu1 %v3444_v57 }
  0xba   : > { %942 = vperm.xlu0 %3046, %v628_v47   ;;  %947 = vperm.xlu1 %3047, %v629_v8   ;;  %v3074_v47 = vld [vmem:[%s5478_s1 + $0x90] sm:$0xff]  }
  0xbe   : > { %2249 = vperm.xlu0 %3046, %v2231_v22   ;;  %2254 = vperm.xlu1 %3047, %v2232_v29   ;;  %v4230_v61 = vpop.permute.xlu1 %667 }
  0xbf   : > { %1205 = vmatmul.mubr.bf16.gmra.mrb[12].mxu0 %v3052_v50  ;;  %1445 = vmatmul.mubr.bf16.gmra.mrb[12].mxu1 %v3057_v44  ;;  %v3075_v50 = vld [vmem:[%s5478_s1 + $0x98] sm:$0xff]  }
  0xc0   : > { %1214 = vmatprep.mubr.bf16.mxu0 %v3444_v57  ;;  %1454 = vmatprep.mubr.bf16.mxu1 %v3444_v57  ;;  %v4211_v32 = vpop.permute.xlu0 %637 }
  0xc2   : > { %2259 = vperm.xlu0 %3046, %v2233_v33   ;;  %2264 = vperm.xlu1 %3047, %v2234_v10   ;;  %v4237_v21 = vpop.permute.xlu1 %677  ;;  %v3076_v33 = vld [vmem:[%s5478_s1 + $0xa0] sm:$0xff]  }
  0xc4   : > { %v4219_v14 = vpop.permute.xlu0 %652 }
  0xc6   : > { %2269 = vperm.xlu0 %3046, %v2235_v62   ;;  %2274 = vperm.xlu1 %3047, %v2236_v37   ;;  %v3077_v37 = vld [vmem:[%s5478_s1 + $0xa8] sm:$0xff]  }
  0xc7   : > { %1215 = vmatmul.mubr.bf16.gmra.mrb[16].mxu0 %v3054_v45  ;;  %1455 = vmatmul.mubr.bf16.gmra.mrb[16].mxu1 %v3059_v6 }
  0xc8   : > { %1224 = vmatprep.mubr.bf16.mxu0 %v3444_v57  ;;  %1464 = vmatprep.mubr.bf16.mxu1 %v3444_v57  ;;  %v4227_v19 = vpop.permute.xlu0 %662 }
  0xca   : > { %2279 = vperm.xlu0 %3046, %v2237_v54   ;;  %2284 = vperm.xlu1 %3047, %v2238_v24   ;;  %v4245_v0 = vpop.permute.xlu1 %687 }
  0xcc   : > { %v4232_v56 = vpop.permute.xlu0 %672 }
  0xce   : > { %2289 = vperm.xlu0 %3046, %v2239_v48   ;;  %2294 = vperm.xlu1 %3047, %v2240_v41   ;;  %v4253_v52 = vpop.permute.xlu1 %697  ;;  %v3078_v48 = vld [vmem:[%s5478_s1 + $0xb0] sm:$0xff]   ;;  %v3079_v41 = vld [vmem:[%s5478_s1 + $0xb8] sm:$0xff]  }
  0xcf   : > { %1225 = vmatmul.mubr.bf16.gmra.mrb[20].mxu0 %v3056_v60  ;;  %1465 = vmatmul.mubr.bf16.gmra.mrb[20].mxu1 %v3061_v63 }
  0xd0   : > { %1234 = vmatprep.mubr.bf16.mxu0 %v3444_v57  ;;  %1474 = vmatprep.mubr.bf16.mxu1 %v3444_v57  ;;  %v4239_v15 = vpop.permute.xlu0 %682 }
  0xd2   : > { %2299 = vperm.xlu0 %3046, %v2241_v3   ;;  %2304 = vperm.xlu1 %3047, %v2242_v12   ;;  %v4258_v35 = vpop.permute.xlu1 %707 }
  0xd4   : > { %v4247_v26 = vpop.permute.xlu0 %692 }
  0xd6   : > { %2309 = vperm.xlu0 %3046, %v2243_v20   ;;  %2314 = vperm.xlu1 %3047, %v2244_v31  }
  0xd7   : > { %1235 = vmatmul.mubr.bf16.gmra.mrb[24].mxu0 %v3058_v5  ;;  %1475 = vmatmul.mubr.bf16.gmra.mrb[24].mxu1 %v3063_v9 }
  0xd8   : > { %1244 = vmatprep.mubr.bf16.mxu0 %v3444_v57  ;;  %1484 = vmatprep.mubr.bf16.mxu1 %v3444_v57  ;;  %v4255_v27 = vpop.permute.xlu0 %702  ;;  %v4265_v39 = vpop.permute.xlu1 %717 }
  0xda   : > { %2319 = vperm.xlu0 %3046, %v2245_v42   ;;  %2324 = vperm.xlu1 %3047, %v2246_v13  }
  0xdc   : > { %v4260_v38 = vpop.permute.xlu0 %712  ;;  %v4273_v46 = vpop.permute.xlu1 %727 }
  0xdf   : > { %1245 = vmatmul.mubr.bf16.gmra.mrb[28].mxu0 %v3060_v16  ;;  %1485 = vmatmul.mubr.bf16.gmra.mrb[28].mxu1 %v3065_v11 }
  0xe0   : > { %1254 = vmatprep.mubr.bf16.mxu0 %v3444_v57  ;;  %v4267_v1 = vpop.permute.xlu0 %722  ;;  %v4281_v59 = vpop.permute.xlu1 %737 }
  0xe1   : > { %5527 = vst [vmem:[#allocation3_spill] sm:$0xff] %v4281_v59 }
  0xe4   : > { %v4275_v53 = vpop.permute.xlu0 %732  ;;  %v4286_v4 = vpop.permute.xlu1 %747 }
  0xe5   : > { %5526 = vst [vmem:[#allocation2_spill] sm:$0xff] %v4275_v53  ;;  %5529 = vst [vmem:[#allocation5_spill] sm:$0xff] %v4286_v4 }
  0xe7   : > { %1255 = vmatmul.mubr.bf16.gmra.mrb[32].mxu0 %v3062_v51 }
  0xe8   : > { %1264 = vmatprep.mubr.bf16.mxu0 %v3444_v57  ;;  %v4283_v17 = vpop.permute.xlu0 %742  ;;  %v4293_v8 = vpop.permute.xlu1 %757 }
  0xe9   : > { %5528 = vst [vmem:[#allocation4_spill] sm:$0xff] %v4283_v17  ;;  %5531 = vst [vmem:[#allocation7_spill] sm:$0xff] %v4293_v8 }
  0xec   : > { %v4288_v40 = vpop.permute.xlu0 %752  ;;  %v4301_v44 = vpop.permute.xlu1 %767 }
  0xed   : > { %5530 = vst [vmem:[#allocation6_spill] sm:$0xff] %v4288_v40  ;;  %5533 = vst [vmem:[#allocation9_spill] sm:$0xff] %v4301_v44 }
  0xef   : > { %1265 = vmatmul.mubr.bf16.gmra.mrb[36].mxu0 %v3064_v18 }
  0xf0   : > { %1274 = vmatprep.mubr.bf16.mxu0 %v3444_v57  ;;  %v4295_v22 = vpop.permute.xlu0 %762  ;;  %v4309_v10 = vpop.permute.xlu1 %777 }
  0xf1   : > { %5532 = vst [vmem:[#allocation8_spill] sm:$0xff] %v4295_v22  ;;  %5535 = vst [vmem:[#allocation11_spill] sm:$0xff] %v4309_v10 }
  0xf4   : > { %v4303_v29 = vpop.permute.xlu0 %772  ;;  %v4314_v45 = vpop.permute.xlu1 %787 }
  0xf5   : > { %5534 = vst [vmem:[#allocation10_spill] sm:$0xff] %v4303_v29  ;;  %5537 = vst [vmem:[#allocation13_spill] sm:$0xff] %v4314_v45 }
  0xf7   : > { %1275 = vmatmul.mubr.bf16.gmra.mrb[40].mxu0 %v3066_v7 }
  0xf8   : > { %1284 = vmatprep.mubr.bf16.mxu0 %v3444_v57  ;;  %v4311_v62 = vpop.permute.xlu0 %782  ;;  %v4321_v54 = vpop.permute.xlu1 %797 }
  0xf9   : > { %5536 = vst [vmem:[#allocation12_spill] sm:$0xff] %v4311_v62  ;;  %5539 = vst [vmem:[#allocation15_spill] sm:$0xff] %v4321_v54 }
  0xfc   : > { %v4316_v6 = vpop.permute.xlu0 %792 }
  0xfd   : > { %5538 = vst [vmem:[#allocation14_spill] sm:$0xff] %v4316_v6 }
  0xff   : > { %1285 = vmatmul.mubr.bf16.gmra.mrb[44].mxu0 %v3067_v30 }
 0x100   : > { %1294 = vmatprep.mubr.bf16.mxu0 %v3444_v57 }
 0x101   : > { %v4323_v24 = vpop.permute.xlu0 %802  ;;  %v4329_v60 = vpop.permute.xlu1 %807 }
 0x102   : > { %5540 = vst [vmem:[#allocation16_spill] sm:$0xff] %v4323_v24  ;;  %5541 = vst [vmem:[#allocation17_spill] sm:$0xff] %v4329_v60 }
 0x105   : > { %v4331_v63 = vpop.permute.xlu0 %812  ;;  %v4337_v3 = vpop.permute.xlu1 %817 }
 0x106   : > { %5542 = vst [vmem:[#allocation18_spill] sm:$0xff] %v4331_v63  ;;  %5543 = vst [vmem:[#allocation19_spill] sm:$0xff] %v4337_v3 }
 0x107   : > { %1295 = vmatmul.mubr.bf16.gmra.mrb[48].mxu0 %v3068_v49 }
 0x108   : > { %1304 = vmatprep.mubr.bf16.mxu0 %v3444_v57 }
 0x109   : > { %v4339_v12 = vpop.permute.xlu0 %822  ;;  %v4341_v20 = vpop.permute.xlu1 %827 }
 0x10a   : > { %5544 = vst [vmem:[#allocation20_spill] sm:$0xff] %v4339_v12  ;;  %5545 = vst [vmem:[#allocation21_spill] sm:$0xff] %v4341_v20 }
 0x10d   : > { %v4343_v5 = vpop.permute.xlu0 %832  ;;  %v4345_v9 = vpop.permute.xlu1 %837 }
 0x10e   : > { %5546 = vst [vmem:[#allocation22_spill] sm:$0xff] %v4343_v5  ;;  %5547 = vst [vmem:[#allocation23_spill] sm:$0xff] %v4345_v9 }
 0x10f   : > { %1305 = vmatmul.mubr.bf16.gmra.mrb[52].mxu0 %v3069_v23 }
 0x110   : > { %1314 = vmatprep.mubr.bf16.mxu0 %v3444_v57 }
 0x111   : > { %v4347_v31 = vpop.permute.xlu0 %842  ;;  %v4349_v42 = vpop.permute.xlu1 %847 }
 0x112   : > { %5548 = vst [vmem:[#allocation24_spill] sm:$0xff] %v4347_v31  ;;  %5549 = vst [vmem:[#allocation25_spill] sm:$0xff] %v4349_v42 }
 0x115   : > { %v4353_v13 = vpop.permute.xlu1 %857 }
 0x116   : > { %5551 = vst [vmem:[#allocation27_spill] sm:$0xff] %v4353_v13 }
 0x117   : > { %1315 = vmatmul.mubr.bf16.gmra.mrb[56].mxu0 %v3070_v28 }
 0x118   : > { %1324 = vmatprep.mubr.bf16.mxu0 %v3444_v57 }
 0x119   : > { %v4357_v11 = vpop.permute.xlu1 %867 }
 0x11a   : > { %5553 = vst [vmem:[#allocation29_spill] sm:$0xff] %v4357_v11 }
 0x11d   : > { %v878_v13 = vpop.permute.xlu1 %877 }
 0x11f   : > { %1325 = vmatmul.mubr.bf16.gmra.mrb[60].mxu0 %v3071_v36 }
 0x120   : > { %1334 = vmatprep.mubr.bf16.mxu0 %v3444_v57 }
 0x127   : > { %1335 = vmatmul.mubr.bf16.gmra.mrb[64].mxu0 %v3072_v2 }
 0x128   : > { %1344 = vmatprep.mubr.bf16.mxu0 %v3444_v57 }
 0x12f   : > { %1345 = vmatmul.mubr.bf16.gmra.mrb[68].mxu0 %v3073_v43 }
 0x130   : > { %1354 = vmatprep.mubr.bf16.mxu0 %v3444_v57 }
 0x137   : > { %1355 = vmatmul.mubr.bf16.gmra.mrb[72].mxu0 %v3074_v47 }
 0x138   : > { %1364 = vmatprep.mubr.bf16.mxu0 %v3444_v57 }
 0x13f   : > { %1365 = vmatmul.mubr.bf16.gmra.mrb[76].mxu0 %v3075_v50 }
 0x140   : > { %1374 = vmatprep.mubr.bf16.mxu0 %v3444_v57 }
 0x147   : > { %1375 = vmatmul.mubr.bf16.gmra.mrb[80].mxu0 %v3076_v33 }
 0x148   : > { %1384 = vmatprep.mubr.bf16.mxu0 %v3444_v57 }
 0x14f   : > { %1385 = vmatmul.mubr.bf16.gmra.mrb[84].mxu0 %v3077_v37 }
 0x150   : > { %1394 = vmatprep.mubr.bf16.mxu0 %v3444_v57 }
 0x157   : > { %1395 = vmatmul.mubr.bf16.gmra.mrb[88].mxu0 %v3078_v48 }
 0x158   : > { %1404 = vmatprep.mubr.bf16.mxu0 %v3444_v57  ;;  %v4351_v57 = vpop.permute.xlu0 %852 }
 0x159   : > { %5550 = vst [vmem:[#allocation26_spill] sm:$0xff] %v4351_v57 }
 0x15c   : > { %v4355_v16 = vpop.permute.xlu0 %862 }
 0x15d   : > { %5552 = vst [vmem:[#allocation28_spill] sm:$0xff] %v4355_v16 }
 0x15f   : > { %1405 = vmatmul.mubr.bf16.gmra.mrb[92].mxu0 %v3079_v41 }
 0x160   : > { %v873_v51 = vpop.permute.xlu0 %872 }
 0x17a   : > { %v1176_v18 = vpop.f32.mrb[0].mxu0  ;;  %v1416_v7 = vpop.f32.mrb[0].mxu1 }
 0x17b   : > { %v1177_v30 = vadd.f32 %v1176_v18, %v4204_v58  ;;  %v1178_v49 = vpop.f32.mrb[1].mxu0  ;;  %v1418_v23 = vpop.f32.mrb[1].mxu1  ;;  %v1417_v2 = vadd.f32 %v1416_v7, %v873_v51 }
 0x17c   : > { %v1179_v28 = vadd.f32 %v1178_v49, %v4204_v58  ;;  %v1180_v36 = vpop.f32.mrb[2].mxu0  ;;  %v1420_v43 = vpop.f32.mrb[2].mxu1  ;;  %v1419_v37 = vadd.f32 %v1418_v23, %v873_v51 }
 0x17d   : > { %v1623_v47 = vmul.f32 0.70710677, %v1177_v30  ;;  %v1181_v50 = vadd.f32 %v1180_v36, %v4211_v32  ;;  %v1182_v33 = vpop.f32.mrb[3].mxu0  ;;  %v1422_v48 = vpop.f32.mrb[3].mxu1  ;;  %v1719_v57 = vmul.f32 0.70710677, %v1417_v2  ;;  %v1421_v49 = vadd.f32 %v1420_v43, %v878_v13 }
 0x17e   : > { %v1624_v41 = vmul.f32 0.70710677, %v1179_v28  ;;  %v1183_v11 = vadd.f32 %v1182_v33, %v4211_v32  ;;  %v1720_v58 = vmul.f32 0.70710677, %v1419_v37  ;;  %v1495_v9 = vmul.f32 0.5, %v1177_v30 }
 0x17f   : > { %3132 = verf.f32 %v1623_v47  ;;  %v1625_v16 = vmul.f32 0.70710677, %v1181_v50  ;;  %v1721_v51 = vmul.f32 0.70710677, %v1421_v49  ;;  %v4365_v33 = vmul.f32 0.5, %v1417_v2  ;;  %v883_v2 = vpop.permute.xlu0 %882 }
 0x180   : > { %3134 = verf.f32 %v1624_v41  ;;  %v1626_v18 = vmul.f32 0.70710677, %v1183_v11  ;;  %v1423_v5 = vadd.f32 %v1422_v48, %v878_v13  ;;  %v1498_v3 = vmul.f32 0.5, %v1183_v11 }
 0x181   : > { %3136 = verf.f32 %v1625_v16  ;;  %v4375_v13 = vmul.f32 0.5, %v1421_v49 }
 0x182   : > { %3138 = verf.f32 %v1626_v18  ;;  %v1186_v7 = vpop.f32.mrb[4].mxu0  ;;  %v1426_v42 = vpop.f32.mrb[4].mxu1  ;;  %v4377_v48 = vmul.f32 0.5, %v1423_v5 }
 0x183   : > { %v1187_v36 = vadd.f32 %v1186_v7, %v4209_v55  ;;  %v1188_v31 = vpop.f32.mrb[5].mxu0  ;;  %v1428_v23 = vpop.f32.mrb[5].mxu1  ;;  %3140 = verf.f32 %v1719_v57  ;;  %v1496_v7 = vmul.f32 0.5, %v1179_v28  ;;  %v4373_v57 = vmul.f32 0.5, %v1419_v37 }
 0x184   : > { %v1189_v32 = vadd.f32 %v1188_v31, %v4209_v55  ;;  %v1190_v47 = vpop.f32.mrb[6].mxu0  ;;  %v4367_v41 = vpop.f32.mrb[6].mxu1  ;;  %3142 = verf.f32 %v1720_v58  ;;  %v1497_v55 = vmul.f32 0.5, %v1181_v50  ;;  %v1722_v28 = vmul.f32 0.70710677, %v1423_v5 }
 0x185   : > { %v1627_v16 = vmul.f32 0.70710677, %v1187_v36  ;;  %v1191_v43 = vadd.f32 %v1190_v47, %v4217_v25  ;;  %v1192_v18 = vpop.f32.mrb[7].mxu0  ;;  %v4370_v20 = vpop.f32.mrb[7].mxu1  ;;  %3144 = verf.f32 %v1721_v51  ;;  %v1427_v47 = vadd.f32 %v1426_v42, %v883_v2 }
 0x186   : > { %v1628_v12 = vmul.f32 0.70710677, %v1189_v32  ;;  %v1193_v30 = vadd.f32 %v1192_v18, %v4217_v25  ;;  %v4379_v51 = vmul.f32 0.5, %v1187_v36  ;;  %v4381_v50 = vmul.f32 0.5, %v1189_v32 }
 0x187   : > { %3146 = verf.f32 %v1627_v16  ;;  %v1629_v31 = vmul.f32 0.70710677, %v1191_v43  ;;  %v4385_v42 = vmul.f32 0.5, %v1191_v43  ;;  %v1723_v24 = vmul.f32 0.70710677, %v1427_v47 }
 0x188   : > { %3148 = verf.f32 %v1628_v12  ;;  %v1630_v63 = vmul.f32 0.70710677, %v1193_v30  ;;  %v4387_v18 = vmul.f32 0.5, %v1193_v30  ;;  %v1429_v54 = vadd.f32 %v1428_v23, %v883_v2 }
 0x189   : > { %v3133_v60 = vpop.eup %3132  ;;  %3150 = verf.f32 %v1629_v31 }
 0x18a   : > { %v3135_v58 = vpop.eup %3134  ;;  %v1879_v25 = vadd.f32 1.0, %v3133_v60  ;;  %3152 = verf.f32 %v1630_v63  ;;  %v1196_v37 = vpop.f32.mrb[8].mxu0  ;;  %v1724_v22 = vmul.f32 0.70710677, %v1429_v54 }
 0x18b   : > { %v4383_v16 = vpop.f32.mrb[8].mxu1  ;;  %v3137_v12 = vpop.eup %3136  ;;  %v1880_v11 = vadd.f32 1.0, %v3135_v58  ;;  %v4390_v49 = vadd.f32 %v1196_v37, %v4219_v14  ;;  %3154 = verf.f32 %v1722_v28  ;;  %v4400_v37 = vmul.f32 0.5, %v1427_v47 }
 0x18c   : > { %v1198_v5 = vpop.f32.mrb[9].mxu0  ;;  %v4392_v31 = vpop.f32.mrb[9].mxu1  ;;  %v1881_v36 = vadd.f32 1.0, %v3137_v12  ;;  %v2007_v10 = vmul.f32 %v1879_v25, %v1495_v9 }
 0x18d   : > { %v3139_v60 = vpop.eup %3138  ;;  %v4395_v32 = vadd.f32 %v1198_v5, %v4219_v14  ;;  %v1200_v63 = vpop.f32.mrb[10].mxu0  ;;  %v1631_v30 = vmul.f32 0.70710677, %v4390_v49  ;;  %v2008_v2 = vmul.f32 %v1880_v11, %v1496_v7  ;;  %v4412_v7 = vmul.f32 0.5, %v1429_v54 }
 0x18e   : > { %v4397_v6 = vpop.f32.mrb[10].mxu1  ;;  %v1882_v43 = vadd.f32 1.0, %v3139_v60  ;;  %v1202_v58 = vpop.f32.mrb[11].mxu0  ;;  %v2009_v12 = vmul.f32 %v1881_v36, %v1497_v55  ;;  %v4406_v5 = vadd.f32 %v1200_v63, %v4225_v34 }
 0x18f   : > { %v4402_v45 = vpop.f32.mrb[11].mxu1  ;;  %v3141_v62 = vpop.eup %3140  ;;  %v1632_v14 = vmul.f32 0.70710677, %v4395_v32  ;;  %3156 = verf.f32 %v1631_v30  ;;  %v1203_v60 = vadd.f32 %v1202_v58, %v4225_v34 }
 0x190   : > { %v3143_v23 = vpop.eup %3142  ;;  %v2010_v29 = vmul.f32 %v1882_v43, %v1498_v3  ;;  %v2167_v28 = vpack.c.bf16 %v2009_v12, %v2007_v10  ;;  %v1633_v47 = vmul.f32 0.70710677, %v4406_v5  ;;  %v4410_v25 = vpop.permute.xlu1 %887  ;;  %v1975_v36 = vadd.f32 1.0, %v3141_v62 }
 0x191   : > { %v3145_v44 = vpop.eup %3144  ;;  %3158 = verf.f32 %v1632_v14  ;;  %v1634_v9 = vmul.f32 0.70710677, %v1203_v60  ;;  %v1431_v34 = vadd.f32 %v4367_v41, %v4410_v25 }
 0x192   : > { %v3147_v8 = vpop.eup %3146  ;;  %v2168_v55 = vpack.c.bf16 %v2010_v29, %v2008_v2  ;;  %3160 = verf.f32 %v1723_v24  ;;  %v1206_v3 = vpop.f32.mrb[12].mxu0  ;;  %v1977_v62 = vadd.f32 1.0, %v3145_v44  ;;  %v4428_v44 = vmul.f32 %v1975_v36, %v4365_v33 }
 0x193   : > { %v3149_v63 = vpop.eup %3148  ;;  %v1883_v40 = vadd.f32 1.0, %v3147_v8  ;;  %3162 = verf.f32 %v1633_v47  ;;  %v4416_v10 = vpop.f32.mrb[12].mxu1  ;;  %v1207_v29 = vadd.f32 %v1206_v3, %v4227_v19  ;;  %v4422_v41 = vmul.f32 0.5, %v1431_v34 }
 0x194   : > { %v3151_v11 = vpop.eup %3150  ;;  %v1884_v43 = vadd.f32 1.0, %v3149_v63  ;;  %3164 = verf.f32 %v1634_v9  ;;  %v1208_v30 = vpop.f32.mrb[13].mxu0  ;;  %2487 = vmatprep.subr.bf16.mxu1 %v2168_v55  ;;  %5554 = vst [vmem:[#allocation30_spill] sm:$0xff] %v4428_v44  ;;  %v1503_v36 = vmul.f32 0.5, %v4390_v49 }
 0x195   : > { %v4419_v24 = vpop.f32.mrb[13].mxu1  ;;  %v3153_v8 = vpop.eup %3152  ;;  %v1885_v58 = vadd.f32 1.0, %v3151_v11  ;;  %v1209_v54 = vadd.f32 %v1208_v30, %v4227_v19  ;;  %2488 = vmatpush1.bf16.msra.mxu1 %v2167_v28  ;;  %3166 = verf.f32 %v1724_v22  ;;  %v2011_v2 = vmul.f32 %v1883_v40, %v4379_v51 }
 0x196   : > { %v1210_v12 = vpop.f32.mrb[14].mxu0  ;;  %v4424_v14 = vpop.f32.mrb[14].mxu1  ;;  %v1886_v47 = vadd.f32 1.0, %v3153_v8  ;;  %v1635_v9 = vmul.f32 0.70710677, %v1207_v29  ;;  %v2012_v3 = vmul.f32 %v1884_v43, %v4381_v50  ;;  %v4438_v51 = vmul.f32 %v1977_v62, %v4375_v13 }
 0x197   : > { %v1212_v63 = vpop.f32.mrb[15].mxu0  ;;  %v4430_v55 = vpop.f32.mrb[15].mxu1  ;;  %v2013_v19 = vmul.f32 %v1885_v58, %v4385_v42  ;;  %v1636_v28 = vmul.f32 0.70710677, %v1209_v54  ;;  %v1211_v22 = vadd.f32 %v1210_v12, %v4230_v61  ;;  %v1976_v58 = vadd.f32 1.0, %v3143_v23 }
 0x198   : > { %v3155_v11 = vpop.eup %3154  ;;  %v2014_v30 = vmul.f32 %v1886_v47, %v4387_v18  ;;  %3168 = verf.f32 %v1635_v9  ;;  %v1213_v40 = vadd.f32 %v1212_v63, %v4230_v61  ;;  %5555 = vst [vmem:[#allocation31_spill] sm:$0xff] %v4438_v51  ;;  %v1504_v18 = vmul.f32 0.5, %v4395_v32 }
 0x199   : > { %v2169_v33 = vpack.c.bf16 %v2013_v19, %v2011_v2  ;;  %3170 = verf.f32 %v1636_v28  ;;  %v1637_v8 = vmul.f32 0.70710677, %v1211_v22  ;;  %v3157_v50 = vpop.eup %3156  ;;  %v1505_v61 = vmul.f32 0.5, %v4406_v5 }
 0x19a   : > { %v1638_v43 = vmul.f32 0.70710677, %v1213_v40  ;;  %v2170_v42 = vpack.c.bf16 %v2014_v30, %v2012_v3  ;;  %v1506_v47 = vmul.f32 0.5, %v1203_v60  ;;  %v1216_v13 = vpop.f32.mrb[16].mxu0  ;;  %v4445_v62 = vpop.f32.mrb[16].mxu1  ;;  %v1887_v2 = vadd.f32 1.0, %v3157_v50 }
 0x19b   : > { %v3159_v4 = vpop.eup %3158  ;;  %3172 = verf.f32 %v1637_v8  ;;  %v1217_v9 = vadd.f32 %v1216_v13, %v4232_v56  ;;  %v1218_v63 = vpop.f32.mrb[17].mxu0  ;;  %v1978_v23 = vadd.f32 1.0, %v3155_v11  ;;  %v4450_v32 = vmul.f32 0.5, %v1207_v29 }
 0x19c   : > { %v3161_v49 = vpop.eup %3160  ;;  %3174 = verf.f32 %v1638_v43  ;;  %2489 = vmatprep.subr.bf16.mxu1 %v2170_v42  ;;  %v4448_v3 = vpop.f32.mrb[17].mxu1  ;;  %v1888_v28 = vadd.f32 1.0, %v3159_v4  ;;  %v4453_v5 = vadd.f32 %v1218_v63, %v4232_v56  ;;  %v1725_v30 = vmul.f32 0.70710677, %v1431_v34 }
 0x19d   : > { %v3163_v19 = vpop.eup %3162  ;;  %v1220_v60 = vpop.f32.mrb[18].mxu0  ;;  %2490 = vmatpush1.bf16.msra.mxu1 %v2169_v33  ;;  %v1508_v13 = vmul.f32 0.5, %v1209_v54  ;;  %v1639_v12 = vmul.f32 0.70710677, %v1217_v9  ;;  %v4458_v11 = vmul.f32 %v1976_v58, %v4373_v57  ;;  %v1509_v51 = vmul.f32 0.5, %v1211_v22 }
 0x19e   : > { %v4455_v8 = vpop.f32.mrb[18].mxu1  ;;  %v3165_v50 = vpop.eup %3164  ;;  %v1889_v43 = vadd.f32 1.0, %v3163_v19  ;;  %v1640_v56 = vmul.f32 0.70710677, %v4453_v5  ;;  %v4464_v33 = vadd.f32 %v1220_v60, %v4237_v21  ;;  %v2015_v34 = vmul.f32 %v1887_v2, %v1503_v36 }
 0x19f   : > { %v1222_v42 = vpop.f32.mrb[19].mxu0  ;;  %5556 = vst [vmem:[#allocation32_spill] sm:$0xff] %v4458_v11  ;;  %v4460_v44 = vpop.f32.mrb[19].mxu1  ;;  %v1890_v29 = vadd.f32 1.0, %v3165_v50  ;;  %3176 = verf.f32 %v1639_v12  ;;  %v2016_v19 = vmul.f32 %v1888_v28, %v1504_v18  ;;  %v1979_v59 = vadd.f32 1.0, %v3161_v49 }
 0x1a0   : > { %v3167_v4 = vpop.eup %3166  ;;  %v2017_v63 = vmul.f32 %v1889_v43, %v1505_v61  ;;  %v4467_v54 = vadd.f32 %v1222_v42, %v4237_v21  ;;  %3178 = verf.f32 %v1640_v56  ;;  %v1641_v57 = vmul.f32 0.70710677, %v4464_v33  ;;  %v4471_v50 = vpop.permute.xlu0 %892 }
 0x1a1   : > { %v2018_v17 = vmul.f32 %v1890_v29, %v1506_v47  ;;  %3180 = verf.f32 %v1725_v30  ;;  %v1510_v36 = vmul.f32 0.5, %v1213_v40  ;;  %v1433_v21 = vadd.f32 %v4370_v20, %v4410_v25 }
 0x1a2   : > { %v3169_v58 = vpop.eup %3168  ;;  %v2171_v11 = vpack.c.bf16 %v2017_v63, %v2015_v34  ;;  %v1642_v22 = vmul.f32 0.70710677, %v4467_v54  ;;  %3182 = verf.f32 %v1641_v57  ;;  %v1226_v12 = vpop.f32.mrb[20].mxu0  ;;  %v4481_v43 = vmul.f32 %v1978_v23, %v4377_v48 }
 0x1a3   : > { %v3171_v60 = vpop.eup %3170  ;;  %v2172_v61 = vpack.c.bf16 %v2018_v17, %v2016_v19  ;;  %v4475_v18 = vpop.f32.mrb[20].mxu1  ;;  %v1891_v47 = vadd.f32 1.0, %v3169_v58  ;;  %v4478_v2 = vadd.f32 %v1226_v12, %v4239_v15  ;;  %v1980_v25 = vadd.f32 1.0, %v3167_v4 }
 0x1a4   : > { %3184 = verf.f32 %v1642_v22  ;;  %v1228_v28 = vpop.f32.mrb[21].mxu0  ;;  %5557 = vst [vmem:[#allocation33_spill] sm:$0xff] %v4481_v43  ;;  %v4483_v49 = vpop.f32.mrb[21].mxu1  ;;  %v1892_v30 = vadd.f32 1.0, %v3171_v60  ;;  %v1726_v42 = vmul.f32 0.70710677, %v1433_v21  ;;  %v4492_v23 = vmul.f32 %v1979_v59, %v4400_v37 }
 0x1a5   : > { %v3173_v40 = vpop.eup %3172  ;;  %v4486_v17 = vadd.f32 %v1228_v28, %v4239_v15  ;;  %2491 = vmatprep.subr.bf16.mxu1 %v2172_v61  ;;  %v1230_v20 = vpop.f32.mrb[22].mxu0  ;;  %v1511_v63 = vmul.f32 0.5, %v1217_v9  ;;  %v1643_v19 = vmul.f32 0.70710677, %v4478_v2  ;;  %v1437_v22 = vadd.f32 %v4383_v16, %v4471_v50 }
 0x1a6   : > { %v4488_v29 = vpop.f32.mrb[22].mxu1  ;;  %v3175_v56 = vpop.eup %3174  ;;  %v1893_v34 = vadd.f32 1.0, %v3173_v40  ;;  %2492 = vmatpush1.bf16.msra.mxu1 %v2171_v11  ;;  %5558 = vst [vmem:[#allocation34_spill] sm:$0xff] %v4492_v23  ;;  %v4498_v4 = vadd.f32 %v1230_v20, %v4245_v0  ;;  %v2019_v9 = vmul.f32 %v1891_v47, %v4450_v32  ;;  %v2020_v12 = vmul.f32 %v1892_v30, %v1508_v13 }
 0x1a7   : > { %v1232_v48 = vpop.f32.mrb[23].mxu0  ;;  %v4494_v57 = vpop.f32.mrb[23].mxu1  ;;  %v1894_v15 = vadd.f32 1.0, %v3175_v56  ;;  %v1644_v58 = vmul.f32 0.70710677, %v4486_v17  ;;  %3186 = verf.f32 %v1643_v19  ;;  %v1512_v40 = vmul.f32 0.5, %v4453_v5 }
 0x1a8   : > { %v2021_v60 = vmul.f32 %v1893_v34, %v1509_v51  ;;  %v1233_v11 = vadd.f32 %v1232_v48, %v4245_v0  ;;  %v1645_v37 = vmul.f32 0.70710677, %v4498_v4  ;;  %v1727_v51 = vmul.f32 0.70710677, %v1437_v22 }
 0x1a9   : > { %v2022_v59 = vmul.f32 %v1894_v15, %v1510_v36  ;;  %3188 = verf.f32 %v1644_v58  ;;  %v3177_v61 = vpop.eup %3176  ;;  %v1513_v13 = vmul.f32 0.5, %v4464_v33  ;;  %v4511_v34 = vmul.f32 %v1980_v25, %v4412_v7 }
 0x1aa   : > { %v2173_v28 = vpack.c.bf16 %v2021_v60, %v2019_v9  ;;  %v1646_v20 = vmul.f32 0.70710677, %v1233_v11  ;;  %3190 = verf.f32 %v1726_v42  ;;  %v3179_v56 = vpop.eup %3178  ;;  %v1895_v43 = vadd.f32 1.0, %v3177_v61  ;;  %v1236_v16 = vpop.f32.mrb[24].mxu0 }
 0x1ab   : > { %3192 = verf.f32 %v1645_v37  ;;  %v2174_v32 = vpack.c.bf16 %v2022_v59, %v2020_v12  ;;  %v4506_v47 = vpop.f32.mrb[24].mxu1  ;;  %v3181_v0 = vpop.eup %3180  ;;  %v1237_v36 = vadd.f32 %v1236_v16, %v4247_v26  ;;  %5559 = vst [vmem:[#allocation35_spill] sm:$0xff] %v4511_v34  ;;  %v1514_v19 = vmul.f32 0.5, %v4467_v54 }
 0x1ac   : > { %3194 = verf.f32 %v1646_v20  ;;  %v1238_v30 = vpop.f32.mrb[25].mxu0  ;;  %v4513_v5 = vpop.f32.mrb[25].mxu1  ;;  %v1981_v58 = vadd.f32 1.0, %v3181_v0  ;;  %v4517_v9 = vmul.f32 0.5, %v1433_v21  ;;  %v1896_v12 = vadd.f32 1.0, %v3179_v56 }
 0x1ad   : > { %v3183_v42 = vpop.eup %3182  ;;  %v1239_v48 = vadd.f32 %v1238_v30, %v4247_v26  ;;  %2493 = vmatprep.subr.bf16.mxu1 %v2174_v32  ;;  %v1240_v15 = vpop.f32.mrb[26].mxu0  ;;  %v1647_v37 = vmul.f32 0.70710677, %v1237_v36  ;;  %3196 = verf.f32 %v1727_v51  ;;  %v4523_v61 = vmul.f32 %v1895_v43, %v1511_v63 }
 0x1ae   : > { %v4519_v33 = vpop.f32.mrb[26].mxu1  ;;  %v3185_v60 = vpop.eup %3184  ;;  %v1897_v59 = vadd.f32 1.0, %v3183_v42  ;;  %2494 = vmatpush1.bf16.msra.mxu1 %v2173_v28  ;;  %v1241_v26 = vadd.f32 %v1240_v15, %v4253_v52  ;;  %v4528_v21 = vadd.f32 %v4392_v31, %v4471_v50  ;;  %v4534_v28 = vmul.f32 %v1981_v58, %v4422_v41 }
 0x1af   : > { %v1242_v7 = vpop.f32.mrb[27].mxu0  ;;  %v4521_v25 = vpop.f32.mrb[27].mxu1  ;;  %v1648_v54 = vmul.f32 0.70710677, %v1239_v48  ;;  %3198 = verf.f32 %v1647_v37  ;;  %v1898_v16 = vadd.f32 1.0, %v3185_v60  ;;  %v1515_v32 = vmul.f32 0.5, %v4478_v2 }
 0x1b0   : > { %v4530_v20 = vmul.f32 %v1897_v59, %v1513_v13  ;;  %v1243_v56 = vadd.f32 %v1242_v7, %v4253_v52  ;;  %5560 = vst [vmem:[#allocation36_spill] sm:$0xff] %v4534_v28  ;;  %v4538_v43 = vmul.f32 0.5, %v4486_v17  ;;  %v1649_v63 = vmul.f32 0.70710677, %v1241_v26  ;;  %v898_v50 = vpop.permute.xlu1 %897 }
 0x1b1   : > { %v3187_v51 = vpop.eup %3186  ;;  %v4544_v52 = vmul.f32 0.5, %v1437_v22  ;;  %v1517_v30 = vmul.f32 0.5, %v4498_v4  ;;  %v4547_v42 = vmul.f32 0.5, %v1233_v11  ;;  %v1728_v17 = vmul.f32 0.70710677, %v4528_v21 }
 0x1b2   : > { %v1650_v0 = vmul.f32 0.70710677, %v1243_v56  ;;  %3200 = verf.f32 %v1649_v63  ;;  %v1246_v2 = vpop.f32.mrb[28].mxu0  ;;  %v4550_v15 = vpop.f32.mrb[28].mxu1  ;;  %v2024_v60 = vmul.f32 %v1896_v12, %v1512_v40  ;;  %v1899_v59 = vadd.f32 1.0, %v3187_v51 }
 0x1b3   : > { %v3189_v41 = vpop.eup %3188  ;;  %5561 = vst [vmem:[#allocation37_spill] sm:$0xff] %v4550_v15  ;;  %3202 = verf.f32 %v1648_v54  ;;  %v1247_v37 = vadd.f32 %v1246_v2, %v4255_v27  ;;  %v1248_v7 = vpop.f32.mrb[29].mxu0  ;;  %v3082_v4 = vld [vmem:[%s5480_s3 + $0x4] ss:$16 sps:$4 sm:$0xff]   ;;  %v2026_v63 = vmul.f32 %v1898_v16, %v1514_v19  ;;  %v1441_v31 = vadd.f32 %v4397_v6, %v898_v50 }
 0x1b4   : > { %v3191_v58 = vpop.eup %3190  ;;  %v4553_v22 = vpop.f32.mrb[29].mxu1  ;;  %3204 = verf.f32 %v1650_v0  ;;  %v1249_v13 = vadd.f32 %v1248_v7, %v4255_v27  ;;  %v1519_v51 = vmul.f32 0.5, %v1237_v36  ;;  %2519 = vmatprep.mubr.bf16.mxu1 %v3082_v4  ;;  %v4564_v53 = vmul.f32 0.5, %v1239_v48 }
 0x1b5   : > { %5562 = vst [vmem:[#allocation38_spill] sm:$0xff] %v4553_v22  ;;  %v3193_v11 = vpop.eup %3192  ;;  %v1250_v23 = vpop.f32.mrb[30].mxu0  ;;  %v1651_v2 = vmul.f32 0.70710677, %v1247_v37  ;;  %3206 = verf.f32 %v1728_v17  ;;  %v1521_v19 = vmul.f32 0.5, %v1241_v26  ;;  %v4566_v16 = vmul.f32 0.5, %v1243_v56 }
 0x1b6   : > { %v4560_v40 = vpop.f32.mrb[30].mxu1  ;;  %v3195_v12 = vpop.eup %3194  ;;  %v1901_v54 = vadd.f32 1.0, %v3193_v11  ;;  %v1652_v27 = vmul.f32 0.70710677, %v1249_v13  ;;  %v4568_v6 = vmul.f32 %v1899_v59, %v1515_v32  ;;  %v1900_v7 = vadd.f32 1.0, %v3189_v41 }
 0x1b7   : > { %5563 = vst [vmem:[#allocation39_spill] sm:$0xff] %v4560_v40  ;;  %v1252_v28 = vpop.f32.mrb[31].mxu0  ;;  %v4562_v34 = vpop.f32.mrb[31].mxu1  ;;  %3208 = verf.f32 %v1651_v2  ;;  %v1902_v36 = vadd.f32 1.0, %v3195_v12  ;;  %v1982_v11 = vadd.f32 1.0, %v3191_v58  ;;  %v2176_v22 = vpack.c.bf16 %v2026_v63, %v2024_v60 }
 0x1b8   : > { %v3197_v0 = vpop.eup %3196  ;;  %v4570_v40 = vmul.f32 %v1901_v54, %v1517_v30  ;;  %v1729_v17 = vmul.f32 0.70710677, %v1441_v31  ;;  %v903_v4 = vpop.permute.xlu0 %902  ;;  %3210 = verf.f32 %v1652_v27  ;;  %v1251_v26 = vadd.f32 %v1250_v23, %v4258_v35 }
 0x1b9   : > { %v3199_v15 = vpop.eup %3198  ;;  %v1443_v56 = vadd.f32 %v4402_v45, %v898_v50  ;;  %v1983_v32 = vadd.f32 1.0, %v3197_v0  ;;  %2495 = vmatprep.subr.bf16.mxu1 %v2176_v22  ;;  %v1253_v41 = vadd.f32 %v1252_v28, %v4258_v35  ;;  %v1447_v30 = vadd.f32 %v4416_v10, %v903_v4 }
 0x1ba   : > { %v2177_v48 = vpack.c.bf16 %v4570_v40, %v4568_v6  ;;  %3212 = verf.f32 %v1729_v17  ;;  %v1256_v58 = vpop.f32.mrb[32].mxu0  ;;  %v4579_v60 = vmul.f32 %v1900_v7, %v4538_v43  ;;  %v1903_v59 = vadd.f32 1.0, %v3199_v15 }
 0x1bb   : > { %v1600_v63 = vmul.f32 0.5, %v4528_v21  ;;  %v1653_v12 = vmul.f32 0.70710677, %v1251_v26  ;;  %v5564_v23 = vpack.c.bf16 %v4530_v20, %v4523_v61  ;;  %v4585_v45 = vpop.f32.mrb[33].mxu0  ;;  %v4588_v22 = vmul.f32 %v1982_v11, %v4517_v9  ;;  %v908_v9 = vpop.permute.xlu1 %907 }
 0x1bc   : > { %v3201_v50 = vpop.eup %3200  ;;  %v4590_v35 = vmul.f32 0.5, %v1247_v37  ;;  %v4592_v10 = vmul.f32 0.5, %v1249_v13  ;;  %v1730_v28 = vmul.f32 0.70710677, %v1443_v56  ;;  %v4594_v43 = vpop.f32.mrb[34].mxu0  ;;  %v1601_v54 = vmul.f32 0.5, %v1441_v31 }
 0x1bd   : > { %2496 = vmatpush1.bf16.msra.mxu1 %v5564_v23  ;;  %v3203_v15 = vpop.eup %3202  ;;  %v1905_v21 = vadd.f32 1.0, %v3201_v50  ;;  %3214 = verf.f32 %v1653_v12  ;;  %v1654_v2 = vmul.f32 0.70710677, %v1253_v41  ;;  %v4596_v61 = vpop.f32.mrb[35].mxu0  ;;  %v4599_v27 = vmul.f32 %v1902_v36, %v4547_v42 }
 0x1be   : > { %v3205_v20 = vpop.eup %3204  ;;  %v4602_v37 = vmul.f32 %v1983_v32, %v4544_v52  ;;  %v1731_v13 = vmul.f32 0.70710677, %v1447_v30  ;;  %v1449_v0 = vadd.f32 %v4419_v24, %v903_v4  ;;  %v4605_v11 = vmul.f32 %v1903_v59, %v1519_v51  ;;  %v913_v50 = vpop.permute.xlu0 %912 }
 0x1bf   : > { %v3207_v7 = vpop.eup %3206  ;;  %v4607_v17 = vmul.f32 %v1905_v21, %v1521_v19  ;;  %3216 = verf.f32 %v1730_v28  ;;  %v1451_v31 = vadd.f32 %v4424_v14, %v908_v9  ;;  %v1904_v12 = vadd.f32 1.0, %v3203_v15 }
 0x1c0   : > { %5565 = vst [vmem:[#allocation40_spill] sm:$0xff] %v4602_v37  ;;  %v1525_v23 = vmul.f32 0.5, %v1251_v26  ;;  %3218 = verf.f32 %v1731_v13  ;;  %v1732_v42 = vmul.f32 0.70710677, %v1449_v0  ;;  %v1906_v32 = vadd.f32 1.0, %v3205_v20 }
 0x1c1   : > { %v3209_v36 = vpop.eup %3208  ;;  %3220 = verf.f32 %v1654_v2  ;;  %v1733_v24 = vmul.f32 0.70710677, %v1451_v31  ;;  %v1984_v4 = vadd.f32 1.0, %v3207_v7  ;;  %v1453_v51 = vadd.f32 %v4430_v55, %v908_v9 }
 0x1c2   : > { %3222 = verf.f32 %v1732_v42  ;;  %v1457_v19 = vadd.f32 %v4445_v62, %v913_v50  ;;  %v4614_v59 = vpop.f32.mrb[36].mxu0  ;;  %v3211_v14 = vpop.eup %3210  ;;  %v4616_v26 = vmul.f32 0.5, %v1443_v56  ;;  %v1257_v28 = vadd.f32 %v1256_v58, %v4260_v38 }
 0x1c3   : > { %3224 = verf.f32 %v1733_v24  ;;  %v4620_v15 = vadd.f32 %v4448_v3, %v913_v50  ;;  %v4622_v21 = vpop.f32.mrb[37].mxu0  ;;  %v4625_v20 = vmul.f32 %v1904_v12, %v4564_v53  ;;  %v1907_v55 = vadd.f32 1.0, %v3209_v36  ;;  %v918_v50 = vpop.permute.xlu1 %917 }
 0x1c4   : > { %v3213_v2 = vpop.eup %3212  ;;  %v4627_v9 = vmul.f32 0.5, %v1253_v41  ;;  %v1603_v62 = vmul.f32 0.5, %v1447_v30  ;;  %v4629_v13 = vpop.f32.mrb[38].mxu0  ;;  %v4632_v56 = vmul.f32 %v1906_v32, %v4566_v16  ;;  %v1734_v58 = vmul.f32 0.70710677, %v1453_v51 }
 0x1c5   : > { %v1985_v7 = vadd.f32 1.0, %v3213_v2  ;;  %v1735_v42 = vmul.f32 0.70710677, %v1457_v19  ;;  %v4634_v3 = vpop.f32.mrb[39].mxu0  ;;  %v4636_v24 = vmul.f32 %v1984_v4, %v1600_v63  ;;  %v1908_v52 = vadd.f32 1.0, %v3211_v14 }
 0x1c6   : > { %v4638_v53 = vmul.f32 0.5, %v1449_v0  ;;  %v1655_v12 = vmul.f32 0.70710677, %v1257_v28  ;;  %v1736_v30 = vmul.f32 0.70710677, %v4620_v15  ;;  %v1461_v16 = vadd.f32 %v4455_v8, %v918_v50 }
 0x1c7   : > { %v3215_v41 = vpop.eup %3214  ;;  %v4640_v36 = vmul.f32 %v1985_v7, %v1601_v54  ;;  %3226 = verf.f32 %v1735_v42  ;;  %v1259_v2 = vadd.f32 %v4585_v45, %v4260_v38  ;;  %v2178_v63 = vpack.c.bf16 %v4599_v27, %v4579_v60 }
 0x1c8   : > { %v1909_v32 = vadd.f32 1.0, %v3215_v41  ;;  %v1261_v0 = vadd.f32 %v4594_v43, %v4265_v39  ;;  %v4651_v14 = vmul.f32 %v1907_v55, %v4590_v35  ;;  %v1605_v7 = vmul.f32 0.5, %v1451_v31 }
 0x1c9   : > { %5566 = vst [vmem:[#allocation41_spill] sm:$0xff] %v4640_v36  ;;  %v3217_v4 = vpop.eup %3216  ;;  %3228 = verf.f32 %v1734_v58  ;;  %v4657_v41 = vmul.f32 0.5, %v1453_v51  ;;  %v4659_v38 = vmul.f32 0.5, %v1457_v19  ;;  %2497 = vmatprep.subr.bf16.mxu1 %v2178_v63  ;;  %v4664_v35 = vmul.f32 %v1908_v52, %v4592_v10  ;;  %v923_v52 = vpop.permute.xlu0 %922 }
 0x1ca   : > { %v3219_v8 = vpop.eup %3218  ;;  %v4655_v42 = vmul.f32 %v1909_v32, %v1525_v23  ;;  %3230 = verf.f32 %v1655_v12  ;;  %v4661_v60 = vpop.f32.mrb[40].mxu0  ;;  %v1737_v27 = vmul.f32 0.70710677, %v1461_v16  ;;  %2498 = vmatpush1.bf16.msra.mxu1 %v2177_v48  ;;  %v4673_v19 = vmul.f32 0.5, %v1257_v28 }
 0x1cb   : > { %v3221_v45 = vpop.eup %3220  ;;  %v1987_v43 = vadd.f32 1.0, %v3219_v8  ;;  %3232 = verf.f32 %v1736_v30  ;;  %v4669_v31 = vpop.f32.mrb[41].mxu0  ;;  %v1656_v55 = vmul.f32 0.70710677, %v1259_v2  ;;  %v1657_v58 = vmul.f32 0.70710677, %v1261_v0 }
 0x1cc   : > { %v3223_v23 = vpop.eup %3222  ;;  %v4675_v12 = vpop.f32.mrb[42].mxu0  ;;  %v1986_v30 = vadd.f32 1.0, %v3217_v4  ;;  %3234 = verf.f32 %v1737_v27  ;;  %v1463_v40 = vadd.f32 %v4460_v44, %v918_v50  ;;  %v1263_v28 = vadd.f32 %v4596_v61, %v4265_v39 }
 0x1cd   : > { %v3225_v10 = vpop.eup %3224  ;;  %v4677_v32 = vmul.f32 %v1987_v43, %v1603_v62  ;;  %v4680_v6 = vpop.f32.mrb[43].mxu0  ;;  %3236 = verf.f32 %v1657_v58  ;;  %v1467_v63 = vadd.f32 %v4475_v18, %v923_v52  ;;  %v1910_v8 = vadd.f32 1.0, %v3221_v45 }
 0x1ce   : > { %v1989_v48 = vadd.f32 1.0, %v3225_v10  ;;  %v4686_v54 = vmul.f32 0.5, %v4620_v15  ;;  %v1738_v51 = vmul.f32 0.70710677, %v1463_v40  ;;  %v1469_v62 = vadd.f32 %v4483_v49, %v923_v52  ;;  %v928_v61 = vpop.permute.xlu1 %927 }
 0x1cf   : > { %5567 = vst [vmem:[#allocation42_spill] sm:$0xff] %v4677_v32  ;;  %v1988_v4 = vadd.f32 1.0, %v3223_v23  ;;  %3238 = verf.f32 %v1656_v55  ;;  %v1658_v44 = vmul.f32 0.70710677, %v1263_v28  ;;  %v4691_v27 = vmul.f32 0.5, %v1259_v2 }
 0x1d0   : > { %v4689_v43 = vmul.f32 %v1989_v48, %v1605_v7  ;;  %v1609_v58 = vmul.f32 0.5, %v1461_v16  ;;  %3240 = verf.f32 %v1738_v51  ;;  %v1739_v39 = vmul.f32 0.70710677, %v1467_v63 }
 0x1d1   : > { %v3227_v50 = vpop.eup %3226  ;;  %v4694_v18 = vmul.f32 %v1986_v30, %v4616_v26  ;;  %3242 = verf.f32 %v1658_v44  ;;  %v1740_v49 = vmul.f32 0.70710677, %v1469_v62  ;;  %v4701_v23 = vmul.f32 %v1910_v8, %v4627_v9  ;;  %v933_v26 = vpop.permute.xlu0 %932 }
 0x1d2   : > { %5568 = vst [vmem:[#allocation43_spill] sm:$0xff] %v4689_v43  ;;  %v4698_v45 = vpop.f32.mrb[44].mxu0  ;;  %v1529_v2 = vmul.f32 0.5, %v1261_v0  ;;  %3244 = verf.f32 %v1739_v39  ;;  %v1471_v16 = vadd.f32 %v4488_v29, %v928_v61  ;;  %v4707_v10 = vmul.f32 %v1988_v4, %v4638_v53 }
 0x1d3   : > { %v3229_v7 = vpop.eup %3228  ;;  %v4704_v51 = vpop.f32.mrb[45].mxu0  ;;  %v1991_v52 = vadd.f32 1.0, %v3227_v50  ;;  %3246 = verf.f32 %v1740_v49  ;;  %v1473_v30 = vadd.f32 %v4494_v57, %v928_v61  ;;  %v4712_v9 = vmul.f32 0.5, %v1463_v40 }
 0x1d4   : > { %v3231_v55 = vpop.eup %3230  ;;  %v4710_v48 = vpop.f32.mrb[46].mxu0  ;;  %v4714_v0 = vmul.f32 0.5, %v1263_v28  ;;  %v1741_v8 = vmul.f32 0.70710677, %v1471_v16  ;;  %v1477_v29 = vadd.f32 %v4506_v47, %v933_v26  ;;  %v1990_v15 = vadd.f32 1.0, %v3229_v7 }
 0x1d5   : > { %v3233_v44 = vpop.eup %3232  ;;  %v4717_v39 = vpop.f32.mrb[47].mxu0  ;;  %v4719_v32 = vmul.f32 0.5, %v1467_v63  ;;  %v1742_v53 = vmul.f32 0.70710677, %v1473_v30  ;;  %v1267_v4 = vadd.f32 %v4614_v59, %v4267_v1  ;;  %v1911_v50 = vadd.f32 1.0, %v3231_v55 }
 0x1d6   : > { %v3235_v57 = vpop.eup %3234  ;;  %v4723_v61 = vmul.f32 0.5, %v1469_v62  ;;  %3248 = verf.f32 %v1741_v8  ;;  %v1743_v40 = vmul.f32 0.70710677, %v1477_v29  ;;  %v4726_v49 = vmul.f32 %v1991_v52, %v4659_v38  ;;  %v938_v7 = vpop.permute.xlu1 %937 }
 0x1d7   : > { %v3237_v28 = vpop.eup %3236  ;;  %v1992_v47 = vadd.f32 1.0, %v3233_v44  ;;  %v1993_v43 = vadd.f32 1.0, %v3235_v57  ;;  %3250 = verf.f32 %v1742_v53  ;;  %v1659_v37 = vmul.f32 0.70710677, %v1267_v4 }
 0x1d8   : > { %5569 = vst [vmem:[#allocation44_spill] sm:$0xff] %v4726_v49  ;;  %v1913_v63 = vadd.f32 1.0, %v3237_v28  ;;  %3252 = verf.f32 %v1743_v40  ;;  %v1479_v36 = vadd.f32 %v4513_v5, %v933_v26  ;;  %v4730_v55 = vmul.f32 %v1990_v15, %v4657_v41 }
 0x1d9   : > { %v3239_v59 = vpop.eup %3238  ;;  %v4732_v62 = vmul.f32 %v1993_v43, %v1609_v58  ;;  %v1269_v8 = vadd.f32 %v4622_v21, %v4267_v1  ;;  %v1481_v38 = vadd.f32 %v4519_v33, %v938_v7  ;;  %v4740_v53 = vmul.f32 %v1911_v50, %v4673_v19 }
 0x1da   : > { %v4737_v52 = vpop.f32.mrb[48].mxu0  ;;  %v3241_v44 = vpop.eup %3240  ;;  %v4742_v57 = vmul.f32 %v1913_v63, %v1529_v2  ;;  %v1744_v5 = vmul.f32 0.70710677, %v1479_v36  ;;  %v2180_v41 = vpack.c.bf16 %v4632_v56, %v4625_v20  ;;  %v4749_v58 = vmul.f32 %v1992_v47, %v4686_v54 }
 0x1db   : > { %5570 = vst [vmem:[#allocation45_spill] sm:$0xff] %v4732_v62  ;;  %v4746_v15 = vpop.f32.mrb[49].mxu0  ;;  %v3243_v43 = vpop.eup %3242  ;;  %v1613_v33 = vmul.f32 0.5, %v1471_v16  ;;  %v1660_v21 = vmul.f32 0.70710677, %v1269_v8  ;;  %v1912_v2 = vadd.f32 1.0, %v3239_v59  ;;  %3254 = verf.f32 %v1659_v37 }
 0x1dc   : > { %v4753_v26 = vpop.f32.mrb[50].mxu0  ;;  %v3245_v19 = vpop.eup %3244  ;;  %v4757_v40 = vmul.f32 0.5, %v1473_v30  ;;  %2499 = vmatprep.subr.bf16.mxu1 %v2180_v41  ;;  %v1615_v28 = vmul.f32 0.5, %v1477_v29  ;;  %3256 = verf.f32 %v1744_v5  ;;  %v1745_v47 = vmul.f32 0.70710677, %v1481_v38  ;;  %v5572_v5 = vld [vmem:[#allocation37_spill] sm:$0xff] }
 0x1dd   : > { %v4759_v20 = vpop.f32.mrb[51].mxu0  ;;  %v3247_v56 = vpop.eup %3246  ;;  %v1995_v54 = vadd.f32 1.0, %v3245_v19  ;;  %v5571_v16 = vpack.c.bf16 %v4607_v17, %v4605_v11  ;;  %v4764_v59 = vmul.f32 0.5, %v1267_v4  ;;  %3258 = verf.f32 %v1660_v21 }
 0x1de   : > { %v943_v63 = vpop.permute.xlu0 %942  ;;  %v1271_v30 = vadd.f32 %v4629_v13, %v4273_v46  ;;  %v1483_v37 = vadd.f32 %v4521_v25, %v938_v7  ;;  %v1994_v41 = vadd.f32 1.0, %v3241_v44  ;;  %3260 = verf.f32 %v1745_v47 }
 0x1df   : > { %2500 = vmatpush1.bf16.msra.mxu1 %v5571_v16  ;;  %v1273_v29 = vadd.f32 %v4634_v3, %v4273_v46  ;;  %v1487_v19 = vadd.f32 %v5572_v5, %v943_v63  ;;  %v4773_v11 = vmul.f32 %v1912_v2, %v4691_v27  ;;  %v1914_v17 = vadd.f32 1.0, %v3243_v43  ;;  %v948_v27 = vpop.permute.xlu1 %947 }
 0x1e0   : > { %v3249_v1 = vpop.eup %3248  ;;  %v1996_v4 = vadd.f32 1.0, %v3247_v56  ;;  %v1661_v16 = vmul.f32 0.70710677, %v1271_v30  ;;  %v4776_v50 = vmul.f32 %v1995_v54, %v4719_v32  ;;  %v4778_v25 = vmul.f32 0.5, %v1479_v36  ;;  %v5575_v56 = vld [vmem:[#allocation38_spill] sm:$0xff] }
 0x1e1   : > { %v3251_v21 = vpop.eup %3250  ;;  %v1997_v13 = vadd.f32 1.0, %v3249_v1  ;;  %v1662_v7 = vmul.f32 0.70710677, %v1273_v29  ;;  %v4780_v47 = vmul.f32 0.5, %v1269_v8  ;;  %v1746_v46 = vmul.f32 0.70710677, %v1483_v37 }
 0x1e2   : > { %5573 = vst [vmem:[#allocation37_spill] sm:$0xff] %v4776_v50  ;;  %v3253_v44 = vpop.eup %3252  ;;  %3262 = verf.f32 %v1661_v16  ;;  %v1747_v3 = vmul.f32 0.70710677, %v1487_v19  ;;  %v4782_v5 = vpop.f32.mrb[52].mxu0  ;;  %v4785_v43 = vmul.f32 %v1994_v41, %v4712_v9  ;;  %v1617_v32 = vmul.f32 0.5, %v1481_v38  ;;  %v5576_v16 = vld [vmem:[#allocation39_spill] sm:$0xff] }
 0x1e3   : > { %v4787_v2 = vmul.f32 %v1997_v13, %v1613_v33  ;;  %v1489_v1 = vadd.f32 %v5575_v56, %v943_v63  ;;  %v4790_v36 = vpop.f32.mrb[53].mxu0  ;;  %v4793_v54 = vmul.f32 %v1914_v17, %v4714_v0  ;;  %v4796_v8 = vmul.f32 %v1996_v4, %v4723_v61  ;;  %v5577_v56 = vld [vmem:[#allocation2_spill] sm:$0xff] }
 0x1e4   : > { %3264 = verf.f32 %v1662_v7  ;;  %v1491_v49 = vadd.f32 %v5576_v16, %v948_v27  ;;  %v4799_v62 = vpop.f32.mrb[54].mxu0  ;;  %v1998_v33 = vadd.f32 1.0, %v3251_v21  ;;  %v1999_v38 = vadd.f32 1.0, %v3253_v44 }
 0x1e5   : > { %5574 = vst [vmem:[#allocation46_spill] sm:$0xff] %v4787_v2  ;;  %3266 = verf.f32 %v1747_v3  ;;  %v4803_v63 = vpop.f32.mrb[55].mxu0  ;;  %v3255_v41 = vpop.eup %3254  ;;  %v1533_v13 = vmul.f32 0.5, %v1271_v30  ;;  %v4805_v0 = vmul.f32 0.5, %v1483_v37  ;;  %v1748_v4 = vmul.f32 0.70710677, %v1489_v1 }
 0x1e6   : > { %3268 = verf.f32 %v1746_v46  ;;  %v1749_v61 = vmul.f32 0.70710677, %v1491_v49  ;;  %v3257_v17 = vpop.eup %3256  ;;  %v1493_v7 = vadd.f32 %v4562_v34, %v948_v27  ;;  %v1277_v16 = vadd.f32 %v4661_v60, %v5577_v56  ;;  %v5578_v37 = vld [vmem:[#allocation3_spill] sm:$0xff] }
 0x1e7   : > { %v4812_v21 = vadd.f32 %v4669_v31, %v5577_v56  ;;  %v3259_v44 = vpop.eup %3258  ;;  %v4814_v3 = vmul.f32 0.5, %v1273_v29  ;;  %v1619_v9 = vmul.f32 0.5, %v1487_v19  ;;  %v2182_v30 = vpack.c.bf16 %v4701_v23, %v4664_v35 }
 0x1e8   : > { %v4820_v46 = vadd.f32 %v4675_v12, %v5578_v37  ;;  %v3261_v50 = vpop.eup %3260  ;;  %v4823_v34 = vmul.f32 %v1998_v33, %v4757_v40  ;;  %v4825_v60 = vmul.f32 %v1999_v38, %v1615_v28  ;;  %v1915_v27 = vadd.f32 1.0, %v3255_v41 }
 0x1e9   : > { %3270 = verf.f32 %v1749_v61  ;;  %v2000_v29 = vadd.f32 1.0, %v3257_v17  ;;  %v2001_v56 = vadd.f32 1.0, %v3261_v50  ;;  %v4829_v19 = vmul.f32 0.5, %v1489_v1  ;;  %2501 = vmatprep.subr.bf16.mxu1 %v2182_v30 }
 0x1ea   : > { %v4827_v31 = vpop.f32.mrb[56].mxu0  ;;  %v1663_v2 = vmul.f32 0.70710677, %v1277_v16  ;;  %v1916_v12 = vadd.f32 1.0, %v3259_v44  ;;  %3272 = verf.f32 %v1748_v4  ;;  %v1750_v23 = vmul.f32 0.70710677, %v1493_v7 }
 0x1eb   : > { %v4831_v35 = vpop.f32.mrb[57].mxu0  ;;  %v1664_v40 = vmul.f32 0.70710677, %v4812_v21  ;;  %v5579_v28 = vpack.c.bf16 %v4655_v42, %v4651_v14  ;;  %v4839_v41 = vmul.f32 %v2001_v56, %v1617_v32  ;;  %v1665_v50 = vmul.f32 0.70710677, %v4820_v46  ;;  %v5580_v4 = vld [vmem:[#allocation4_spill] sm:$0xff] }
 0x1ec   : > { %v4837_v33 = vpop.f32.mrb[58].mxu0  ;;  %v3263_v38 = vpop.eup %3262  ;;  %3274 = verf.f32 %v1663_v2  ;;  %v1283_v1 = vadd.f32 %v4680_v6, %v5578_v37  ;;  %v1287_v44 = vadd.f32 %v4698_v45, %v5580_v4  ;;  %v1289_v14 = vadd.f32 %v4704_v51, %v5580_v4 }
 0x1ed   : > { %2502 = vmatpush1.bf16.msra.mxu1 %v5579_v28  ;;  %v4844_v61 = vpop.f32.mrb[59].mxu0  ;;  %v1917_v17 = vadd.f32 1.0, %v3263_v38  ;;  %3276 = verf.f32 %v1664_v40  ;;  %v4851_v32 = vmul.f32 %v1915_v27, %v4764_v59  ;;  %v1621_v30 = vmul.f32 0.5, %v1491_v49 }
 0x1ee   : > { %v3265_v42 = vpop.eup %3264  ;;  %3278 = verf.f32 %v1665_v50  ;;  %v4856_v37 = vmul.f32 %v2000_v29, %v4778_v25  ;;  %v4860_v40 = vmul.f32 0.5, %v1493_v7  ;;  %v1666_v45 = vmul.f32 0.70710677, %v1283_v1  ;;  %v5581_v7 = vld [vmem:[#allocation5_spill] sm:$0xff] }
 0x1ef   : > { %v3267_v6 = vpop.eup %3266  ;;  %v4858_v56 = vmul.f32 %v1917_v17, %v1533_v13  ;;  %v2044_v51 = vmul.f32 %v1916_v12, %v4780_v47  ;;  %3280 = verf.f32 %v1750_v23  ;;  %v1667_v59 = vmul.f32 0.70710677, %v1287_v44 }
 0x1f0   : > { %v3269_v28 = vpop.eup %3268  ;;  %v2003_v38 = vadd.f32 1.0, %v3267_v6  ;;  %v1918_v49 = vadd.f32 1.0, %v3265_v42  ;;  %3282 = verf.f32 %v1666_v45  ;;  %v1668_v50 = vmul.f32 0.70710677, %v1289_v14  ;;  %v5582_v42 = vld [vmem:[#allocation6_spill] sm:$0xff] }
 0x1f1   : > { %v1535_v25 = vmul.f32 0.5, %v1277_v16  ;;  %3284 = verf.f32 %v1667_v59  ;;  %v2184_v13 = vpack.c.bf16 %v4793_v54, %v4773_v11  ;;  %v1291_v29 = vadd.f32 %v4710_v48, %v5581_v7 }
 0x1f2   : > { %v4865_v4 = vpop.f32.mrb[60].mxu0  ;;  %v2002_v23 = vadd.f32 1.0, %v3269_v28  ;;  %3286 = verf.f32 %v1668_v50  ;;  %v1293_v17 = vadd.f32 %v4717_v39, %v5581_v7  ;;  %v4877_v6 = vadd.f32 %v4737_v52, %v5582_v42 }
 0x1f3   : > { %v4871_v47 = vpop.f32.mrb[61].mxu0  ;;  %v3271_v12 = vpop.eup %3270  ;;  %v4881_v45 = vmul.f32 %v2003_v38, %v1619_v9  ;;  %2503 = vmatprep.subr.bf16.mxu1 %v2184_v13  ;;  %v1669_v54 = vmul.f32 0.70710677, %v1291_v29  ;;  %v4885_v48 = vadd.f32 %v4746_v15, %v5582_v42  ;;  %v2046_v39 = vmul.f32 %v1918_v49, %v4814_v3 }
 0x1f4   : > { %v4879_v16 = vpop.f32.mrb[62].mxu0  ;;  %v2005_v11 = vadd.f32 1.0, %v3271_v12  ;;  %v3273_v59 = vpop.eup %3272  ;;  %v1536_v50 = vmul.f32 0.5, %v4812_v21  ;;  %v1537_v52 = vmul.f32 0.5, %v4820_v46  ;;  %v5583_v9 = vpack.c.bf16 %v4742_v57, %v4740_v53 }
 0x1f5   : > { %v4887_v28 = vpop.f32.mrb[63].mxu0  ;;  %v1670_v38 = vmul.f32 0.70710677, %v1293_v17  ;;  %v1538_v12 = vmul.f32 0.5, %v1283_v1  ;;  %3288 = verf.f32 %v1669_v54  ;;  %v1671_v15 = vmul.f32 0.70710677, %v4877_v6 }
 0x1f6   : > { %2504 = vmatpush1.bf16.msra.mxu1 %v5583_v9  ;;  %v3275_v13 = vpop.eup %3274  ;;  %v4895_v7 = vmul.f32 %v2005_v11, %v1621_v30  ;;  %v4898_v27 = vmul.f32 0.5, %v1287_v44  ;;  %v1672_v21 = vmul.f32 0.70710677, %v4885_v48  ;;  %v4902_v46 = vmul.f32 %v2002_v23, %v4805_v0  ;;  %v5585_v23 = vld [vmem:[#allocation8_spill] sm:$0xff] }
 0x1f7   : > { %v3277_v42 = vpop.eup %3276  ;;  %v1919_v2 = vadd.f32 1.0, %v3275_v13  ;;  %3290 = verf.f32 %v1670_v38  ;;  %v2004_v53 = vadd.f32 1.0, %v3273_v59  ;;  %v4906_v30 = vmul.f32 0.5, %v1289_v14  ;;  %v5584_v38 = vld [vmem:[#allocation7_spill] sm:$0xff] }
 0x1f8   : > { %v3279_v3 = vpop.eup %3278  ;;  %v1920_v1 = vadd.f32 1.0, %v3277_v42  ;;  %3292 = verf.f32 %v1671_v15  ;;  %v2186_v11 = vpack.c.bf16 %v2046_v39, %v2044_v51  ;;  %v1541_v9 = vmul.f32 0.5, %v1291_v29 }
 0x1f9   : > { %v1921_v49 = vadd.f32 1.0, %v3279_v3  ;;  %v3281_v44 = vpop.eup %3280  ;;  %v1301_v13 = vadd.f32 %v4753_v26, %v5584_v38  ;;  %v1303_v0 = vadd.f32 %v4759_v20, %v5584_v38  ;;  %v4916_v59 = vadd.f32 %v4782_v5, %v5585_v23 }
 0x1fa   : > { %v4908_v54 = vpop.f32.mrb[64].mxu0  ;;  %v3283_v42 = vpop.eup %3282  ;;  %v2047_v3 = vmul.f32 %v1919_v2, %v1535_v25  ;;  %3294 = verf.f32 %v1672_v21  ;;  %2505 = vmatprep.subr.bf16.mxu1 %v2186_v11  ;;  %v4922_v51 = vadd.f32 %v4790_v36, %v5585_v23  ;;  %v4927_v20 = vmul.f32 %v2004_v53, %v4829_v19 }
 0x1fb   : > { %v4918_v14 = vpop.f32.mrb[65].mxu0  ;;  %v2049_v15 = vmul.f32 %v1921_v49, %v1537_v52  ;;  %v3285_v26 = vpop.eup %3284  ;;  %v1922_v39 = vadd.f32 1.0, %v3283_v42  ;;  %v1542_v5 = vmul.f32 0.5, %v1293_v17  ;;  %v1673_v38 = vmul.f32 0.70710677, %v1301_v13  ;;  %v5587_v49 = vld [vmem:[#allocation9_spill] sm:$0xff] }
 0x1fc   : > { %v4924_v29 = vpop.f32.mrb[66].mxu0  ;;  %v5586_v57 = vpack.c.bf16 %v4858_v56, %v4851_v32  ;;  %v3287_v25 = vpop.eup %3286  ;;  %v2048_v52 = vmul.f32 %v1920_v1, %v1536_v50  ;;  %v1674_v36 = vmul.f32 0.70710677, %v1303_v0  ;;  %v4936_v11 = vadd.f32 %v4799_v62, %v5587_v49 }
 0x1fd   : > { %v4932_v2 = vpop.f32.mrb[67].mxu0  ;;  %v2187_v21 = vpack.c.bf16 %v2049_v15, %v2047_v3  ;;  %v2050_v23 = vmul.f32 %v1922_v39, %v1538_v12  ;;  %3296 = verf.f32 %v1673_v38  ;;  %v1675_v19 = vmul.f32 0.70710677, %v4916_v59  ;;  %v5588_v39 = vld [vmem:[#allocation10_spill] sm:$0xff] }
 0x1fe   : > { %2506 = vmatpush1.bf16.msra.mxu1 %v5586_v57  ;;  %v4941_v17 = vadd.f32 %v4803_v63, %v5587_v49  ;;  %v1923_v32 = vadd.f32 1.0, %v3285_v26  ;;  %v1543_v56 = vmul.f32 0.5, %v4877_v6  ;;  %3298 = verf.f32 %v1674_v36  ;;  %v5589_v49 = vld [vmem:[#allocation11_spill] sm:$0xff] }
 0x1ff   : > { %v1676_v50 = vmul.f32 0.70710677, %v4922_v51  ;;  %v3289_v53 = vpop.eup %3288  ;;  %v2006_v57 = vadd.f32 1.0, %v3281_v44  ;;  %v1924_v1 = vadd.f32 1.0, %v3287_v25  ;;  %3300 = verf.f32 %v1675_v19 }
 0x200   : > { %v2188_v62 = vpack.c.bf16 %v2050_v23, %v2048_v52  ;;  %v1925_v12 = vadd.f32 1.0, %v3289_v53  ;;  %v1544_v3 = vmul.f32 0.5, %v4885_v48  ;;  %v1677_v15 = vmul.f32 0.70710677, %v4936_v11 }
 0x201   : > { %v3291_v42 = vpop.eup %3290  ;;  %3302 = verf.f32 %v1676_v50  ;;  %v1678_v6 = vmul.f32 0.70710677, %v4941_v17  ;;  %v4952_v38 = vadd.f32 %v4827_v31, %v5588_v39  ;;  %v4956_v44 = vadd.f32 %v4831_v35, %v5588_v39  ;;  %v5591_v39 = vld [vmem:[#allocation13_spill] sm:$0xff] }
 0x202   : > { %v4947_v63 = vpop.f32.mrb[68].mxu0  ;;  %v1926_v26 = vadd.f32 1.0, %v3291_v42  ;;  %2507 = vmatprep.subr.bf16.mxu1 %v2188_v62  ;;  %v3293_v48 = vpop.eup %3292  ;;  %v2051_v52 = vmul.f32 %v1923_v32, %v4898_v27  ;;  %v2053_v36 = vmul.f32 %v1925_v12, %v1541_v9  ;;  %3304 = verf.f32 %v1677_v15 }
 0x203   : > { %v4958_v25 = vpop.f32.mrb[69].mxu0  ;;  %2508 = vmatpush1.bf16.msra.mxu1 %v2187_v21  ;;  %v4963_v23 = vadd.f32 %v4837_v33, %v5589_v49  ;;  %v4968_v31 = vmul.f32 %v2006_v57, %v4860_v40  ;;  %v2052_v35 = vmul.f32 %v1924_v1, %v4906_v30  ;;  %3306 = verf.f32 %v1678_v6 }
 0x204   : > { %v4965_v19 = vpop.f32.mrb[70].mxu0  ;;  %v2054_v50 = vmul.f32 %v1926_v26, %v1542_v5  ;;  %v3295_v62 = vpop.eup %3294  ;;  %v2189_v27 = vpack.c.bf16 %v2053_v36, %v2051_v52  ;;  %v1545_v9 = vmul.f32 0.5, %v1301_v13  ;;  %v1546_v32 = vmul.f32 0.5, %v1303_v0  ;;  %v5590_v5 = vld [vmem:[#allocation12_spill] sm:$0xff] }
 0x205   : > { %v4971_v53 = vpop.f32.mrb[71].mxu0  ;;  %v1679_v21 = vmul.f32 0.70710677, %v4952_v38  ;;  %v1927_v42 = vadd.f32 1.0, %v3293_v48  ;;  %v1547_v33 = vmul.f32 0.5, %v4916_v59  ;;  %v4979_v30 = vadd.f32 %v4844_v61, %v5589_v49 }
 0x206   : > { %v1680_v12 = vmul.f32 0.70710677, %v4956_v44  ;;  %v2190_v15 = vpack.c.bf16 %v2054_v50, %v2052_v35  ;;  %v1681_v40 = vmul.f32 0.70710677, %v4963_v23  ;;  %v4983_v57 = vadd.f32 %v4865_v4, %v5590_v5 }
 0x207   : > { %3308 = verf.f32 %v1679_v21  ;;  %v3297_v13 = vpop.eup %3296  ;;  %v1928_v0 = vadd.f32 1.0, %v3295_v62  ;;  %v1548_v1 = vmul.f32 0.5, %v4922_v51  ;;  %v4988_v59 = vadd.f32 %v4871_v47, %v5590_v5 }
 0x208   : > { %3310 = verf.f32 %v1680_v12  ;;  %2509 = vmatprep.subr.bf16.mxu1 %v2190_v15  ;;  %v3299_v26 = vpop.eup %3298  ;;  %v1929_v6 = vadd.f32 1.0, %v3297_v13  ;;  %v1682_v61 = vmul.f32 0.70710677, %v4979_v30  ;;  %v4993_v4 = vadd.f32 %v4879_v16, %v5591_v39 }
 0x209   : > { %3312 = verf.f32 %v1681_v40  ;;  %2510 = vmatpush1.bf16.msra.mxu1 %v2189_v27  ;;  %v3301_v52 = vpop.eup %3300  ;;  %v2055_v51 = vmul.f32 %v1927_v42, %v1543_v56  ;;  %v1930_v36 = vadd.f32 1.0, %v3299_v26  ;;  %v1683_v49 = vmul.f32 0.70710677, %v4983_v57 }
 0x20a   : > { %v4995_v48 = vpop.f32.mrb[72].mxu0  ;;  %v5000_v47 = vadd.f32 %v4887_v28, %v5591_v39  ;;  %v2057_v62 = vmul.f32 %v1929_v6, %v1545_v9  ;;  %v1931_v27 = vadd.f32 1.0, %v3301_v52  ;;  %3314 = verf.f32 %v1682_v61 }
 0x20b   : > { %v5002_v35 = vpop.f32.mrb[73].mxu0  ;;  %v3303_v50 = vpop.eup %3302  ;;  %v1684_v16 = vmul.f32 0.70710677, %v4988_v59  ;;  %v2056_v12 = vmul.f32 %v1928_v0, %v1544_v3  ;;  %v2058_v15 = vmul.f32 %v1930_v36, %v1546_v32  ;;  %3316 = verf.f32 %v1683_v49  ;;  %v5592_v32 = vld [vmem:[#allocation14_spill] sm:$0xff] }
 0x20c   : > { %v5005_v21 = vpop.f32.mrb[74].mxu0  ;;  %v1932_v56 = vadd.f32 1.0, %v3303_v50  ;;  %v3305_v40 = vpop.eup %3304  ;;  %v2191_v5 = vpack.c.bf16 %v2057_v62, %v2055_v51  ;;  %v1549_v28 = vmul.f32 0.5, %v4936_v11  ;;  %v1685_v13 = vmul.f32 0.70710677, %v4993_v4 }
 0x20d   : > { %v5007_v42 = vpop.f32.mrb[75].mxu0  ;;  %3318 = verf.f32 %v1684_v16  ;;  %v3307_v9 = vpop.eup %3306  ;;  %v2059_v26 = vmul.f32 %v1931_v27, %v1547_v33  ;;  %v1933_v6 = vadd.f32 1.0, %v3305_v40  ;;  %v1550_v61 = vmul.f32 0.5, %v4941_v17  ;;  %v5593_v33 = vld [vmem:[#allocation15_spill] sm:$0xff] }
 0x20e   : > { %v2192_v39 = vpack.c.bf16 %v2058_v15, %v2056_v12  ;;  %v1934_v52 = vadd.f32 1.0, %v3307_v9  ;;  %3320 = verf.f32 %v1685_v13  ;;  %v1686_v3 = vmul.f32 0.70710677, %v5000_v47 }
 0x20f   : > { %v5015_v0 = vadd.f32 %v4908_v54, %v5592_v32  ;;  %v2060_v51 = vmul.f32 %v1932_v56, %v1548_v1  ;;  %v2061_v36 = vmul.f32 %v1933_v6, %v1549_v28  ;;  %v5019_v11 = vadd.f32 %v4918_v14, %v5592_v32 }
 0x210   : > { %2511 = vmatprep.subr.bf16.mxu1 %v2192_v39  ;;  %v5023_v49 = vadd.f32 %v4924_v29, %v5593_v33  ;;  %v2062_v50 = vmul.f32 %v1934_v52, %v1550_v61  ;;  %3322 = verf.f32 %v1686_v3  ;;  %v5028_v54 = vadd.f32 %v4932_v2, %v5593_v33  ;;  %v5594_v52 = vld [vmem:[#allocation16_spill] sm:$0xff] }
 0x211   : > { %v3309_v17 = vpop.eup %3308  ;;  %2512 = vmatpush1.bf16.msra.mxu1 %v2191_v5  ;;  %v1687_v62 = vmul.f32 0.70710677, %v5015_v0  ;;  %v2193_v16 = vpack.c.bf16 %v2061_v36, %v2059_v26  ;;  %v1551_v14 = vmul.f32 0.5, %v4952_v38  ;;  %v1688_v29 = vmul.f32 0.70710677, %v5019_v11 }
 0x212   : > { %v5030_v1 = vpop.f32.mrb[76].mxu0  ;;  %v3311_v27 = vpop.eup %3310  ;;  %v1935_v12 = vadd.f32 1.0, %v3309_v17  ;;  %v1552_v40 = vmul.f32 0.5, %v4956_v44  ;;  %v1553_v5 = vmul.f32 0.5, %v4963_v23  ;;  %v2194_v28 = vpack.c.bf16 %v2062_v50, %v2060_v51 }
 0x213   : > { %v5034_v15 = vpop.f32.mrb[77].mxu0  ;;  %v3313_v56 = vpop.eup %3312  ;;  %3324 = verf.f32 %v1687_v62  ;;  %v1936_v13 = vadd.f32 1.0, %v3311_v27  ;;  %v1689_v26 = vmul.f32 0.70710677, %v5023_v49  ;;  %v1554_v39 = vmul.f32 0.5, %v4979_v30 }
 0x214   : > { %v5038_v2 = vpop.f32.mrb[78].mxu0  ;;  %v1937_v9 = vadd.f32 1.0, %v3313_v56  ;;  %3326 = verf.f32 %v1688_v29  ;;  %v3315_v6 = vpop.eup %3314  ;;  %v2063_v61 = vmul.f32 %v1935_v12, %v1551_v14  ;;  %2513 = vmatprep.subr.bf16.mxu1 %v2194_v28  ;;  %v1690_v44 = vmul.f32 0.70710677, %v5028_v54 }
 0x215   : > { %v5041_v38 = vpop.f32.mrb[79].mxu0  ;;  %v5047_v23 = vadd.f32 %v4947_v63, %v5594_v52  ;;  %v3317_v3 = vpop.eup %3316  ;;  %v1938_v51 = vadd.f32 1.0, %v3315_v6  ;;  %3328 = verf.f32 %v1689_v26  ;;  %2514 = vmatpush1.bf16.msra.mxu1 %v2193_v16  ;;  %v5051_v36 = vadd.f32 %v4958_v25, %v5594_v52  ;;  %v5595_v25 = vld [vmem:[#allocation17_spill] sm:$0xff]  ;;  %v5596_v6 = vld [vmem:[#allocation18_spill] sm:$0xff] }
 0x216   : > { %v2065_v32 = vmul.f32 %v1937_v9, %v1553_v5  ;;  %v1555_v17 = vmul.f32 0.5, %v4983_v57  ;;  %v1556_v30 = vmul.f32 0.5, %v4988_v59  ;;  %3330 = verf.f32 %v1690_v44 }
 0x217   : > { %v3319_v33 = vpop.eup %3318  ;;  %v1691_v50 = vmul.f32 0.70710677, %v5047_v23  ;;  %v2064_v62 = vmul.f32 %v1936_v13, %v1552_v40  ;;  %v2066_v27 = vmul.f32 %v1938_v51, %v1554_v39  ;;  %v1939_v14 = vadd.f32 1.0, %v3317_v3 }
 0x218   : > { %v2195_v63 = vpack.c.bf16 %v2065_v32, %v2063_v61  ;;  %v3321_v12 = vpop.eup %3320  ;;  %v1557_v29 = vmul.f32 0.5, %v4993_v4  ;;  %v1692_v16 = vmul.f32 0.70710677, %v5051_v36  ;;  %v5060_v56 = vadd.f32 %v4965_v19, %v5595_v25 }
 0x219   : > { %3332 = verf.f32 %v1691_v50  ;;  %v1940_v59 = vadd.f32 1.0, %v3319_v33  ;;  %v1941_v5 = vadd.f32 1.0, %v3321_v12  ;;  %v2196_v28 = vpack.c.bf16 %v2066_v27, %v2064_v62 }
 0x21a   : > { %v5062_v57 = vpop.f32.mrb[80].mxu0  ;;  %v5066_v40 = vadd.f32 %v4971_v53, %v5595_v25  ;;  %v3323_v9 = vpop.eup %3322  ;;  %v1558_v4 = vmul.f32 0.5, %v5000_v47  ;;  %3334 = verf.f32 %v1692_v16  ;;  %v1693_v26 = vmul.f32 0.70710677, %v5060_v56  ;;  %v5597_v16 = vld [vmem:[#allocation19_spill] sm:$0xff] }
 0x21b   : > { %v5068_v13 = vpop.f32.mrb[81].mxu0  ;;  %v5074_v19 = vadd.f32 %v4995_v48, %v5596_v6  ;;  %v2067_v39 = vmul.f32 %v1939_v14, %v1555_v17  ;;  %v2069_v44 = vmul.f32 %v1941_v5, %v1557_v29  ;;  %v1942_v52 = vadd.f32 1.0, %v3323_v9  ;;  %2515 = vmatprep.subr.bf16.mxu1 %v2196_v28  ;;  %v5598_v28 = vld [vmem:[#allocation20_spill] sm:$0xff] }
 0x21c   : > { %v5076_v61 = vpop.f32.mrb[82].mxu0  ;;  %v1694_v53 = vmul.f32 0.70710677, %v5066_v40  ;;  %v1559_v47 = vmul.f32 0.5, %v5015_v0  ;;  %3336 = verf.f32 %v1693_v26  ;;  %2516 = vmatpush1.bf16.msra.mxu1 %v2195_v63  ;;  %v5085_v48 = vadd.f32 %v5002_v35, %v5596_v6 }
 0x21d   : > { %v5079_v3 = vpop.f32.mrb[83].mxu0  ;;  %v3325_v32 = vpop.eup %3324  ;;  %v1695_v51 = vmul.f32 0.70710677, %v5074_v19  ;;  %v2068_v17 = vmul.f32 %v1940_v59, %v1556_v30  ;;  %v2197_v50 = vpack.c.bf16 %v2069_v44, %v2067_v39  ;;  %v2070_v62 = vmul.f32 %v1942_v52, %v1558_v4  ;;  %v3080_v30 = vld [vmem:[%s5480_s3] ss:$16 sps:$4 sm:$0xff]  }
 0x21e   : > { %v3327_v33 = vpop.eup %3326  ;;  %3338 = verf.f32 %v1694_v53  ;;  %v1943_v27 = vadd.f32 1.0, %v3325_v32  ;;  %v1560_v14 = vmul.f32 0.5, %v5019_v11  ;;  %v1696_v29 = vmul.f32 0.70710677, %v5085_v48 }
 0x21f   : > { %v1944_v12 = vadd.f32 1.0, %v3327_v33  ;;  %v3329_v0 = vpop.eup %3328  ;;  %3340 = verf.f32 %v1695_v51  ;;  %v2198_v63 = vpack.c.bf16 %v2070_v62, %v2068_v17  ;;  %v5091_v25 = vadd.f32 %v5005_v21, %v5597_v16  ;;  %v3083_v21 = vld [vmem:[%s5480_s3 + $0x24] ss:$16 sps:$4 sm:$0xff]  }
 0x220   : > { %v5095_v35 = vadd.f32 %v5007_v42, %v5597_v16  ;;  %v3331_v59 = vpop.eup %3330  ;;  %v1561_v11 = vmul.f32 0.5, %v5023_v49  ;;  %v1945_v5 = vadd.f32 1.0, %v3329_v0  ;;  %3342 = verf.f32 %v1696_v29 }
 0x221   : > { %v5103_v9 = vadd.f32 %v5030_v1, %v5598_v28  ;;  %v1562_v42 = vmul.f32 0.5, %v5028_v54  ;;  %v1946_v26 = vadd.f32 1.0, %v3331_v59  ;;  %v1563_v6 = vmul.f32 0.5, %v5047_v23  ;;  %2517 = vmatprep.subr.bf16.mxu1 %v2198_v63 }
 0x222   : > { %v5105_v4 = vpop.f32.mrb[84].mxu0  ;;  %v1697_v49 = vmul.f32 0.70710677, %v5091_v25  ;;  %v2071_v52 = vmul.f32 %v1943_v27, %v1559_v47  ;;  %v2073_v1 = vmul.f32 %v1945_v5, %v1561_v11  ;;  %2518 = vmatpush1.bf16.msra.mxu1 %v2197_v50  ;;  %v1698_v53 = vmul.f32 0.70710677, %v5095_v35  ;;  %v5599_v47 = vld [vmem:[#allocation21_spill] sm:$0xff] }
 0x223   : > { %v5113_v39 = vpop.f32.mrb[85].mxu0  ;;  %v3333_v44 = vpop.eup %3332  ;;  %v1699_v32 = vmul.f32 0.70710677, %v5103_v9  ;;  %v2072_v33 = vmul.f32 %v1944_v12, %v1560_v14  ;;  %v2074_v54 = vmul.f32 %v1946_v26, %v1562_v42  ;;  %v5121_v23 = vadd.f32 %v5034_v15, %v5598_v28 }
 0x224   : > { %v5117_v51 = vpop.f32.mrb[86].mxu0  ;;  %3344 = verf.f32 %v1697_v49  ;;  %v3335_v62 = vpop.eup %3334  ;;  %v2199_v29 = vpack.c.bf16 %v2073_v1, %v2071_v52  ;;  %v5127_v50 = vadd.f32 %v5038_v2, %v5599_v47  ;;  %v5131_v27 = vadd.f32 %v5041_v38, %v5599_v47 }
 0x225   : > { %v5123_v17 = vpop.f32.mrb[87].mxu0  ;;  %3346 = verf.f32 %v1698_v53  ;;  %v1947_v14 = vadd.f32 1.0, %v3333_v44  ;;  %v1564_v12 = vmul.f32 0.5, %v5051_v36  ;;  %v1565_v0 = vmul.f32 0.5, %v5060_v56  ;;  %2520 = vmatmul.mubr.bf16.vlgmr.msra.gmra.mrb[32].mxu1 %v3080_v30  ;;  %v5600_v56 = vld [vmem:[#allocation22_spill] sm:$0xff] }
 0x226   : > { %3348 = verf.f32 %v1699_v32  ;;  %v3337_v15 = vpop.eup %3336  ;;  %v1948_v63 = vadd.f32 1.0, %v3335_v62  ;;  %v1700_v16 = vmul.f32 0.70710677, %v5121_v23  ;;  %v2200_v59 = vpack.c.bf16 %v2074_v54, %v2072_v33  ;;  %2529 = vmatprep.mubr.bf16.mxu1 %v3083_v21  ;;  %v3086_v54 = vld [vmem:[%s5480_s3 + $0x44] ss:$16 sps:$4 sm:$0xff]  }
 0x227   : > { %v1701_v11 = vmul.f32 0.70710677, %v5127_v50  ;;  %v1949_v5 = vadd.f32 1.0, %v3337_v15  ;;  %v1566_v38 = vmul.f32 0.5, %v5066_v40  ;;  %v1567_v28 = vmul.f32 0.5, %v5074_v19  ;;  %v5601_v19 = vld [vmem:[#allocation23_spill] sm:$0xff] }
 0x228   : > { %v3339_v2 = vpop.eup %3338  ;;  %v1702_v36 = vmul.f32 0.70710677, %v5131_v27  ;;  %3350 = verf.f32 %v1700_v16  ;;  %2600 = vmatprep.subr.bf16.mxu1 %v2200_v59  ;;  %v5142_v30 = vadd.f32 %v5062_v57, %v5600_v56  ;;  %v5146_v26 = vadd.f32 %v5068_v13, %v5600_v56  ;;  %v3085_v57 = vld [vmem:[%s5480_s3 + $0x20] ss:$16 sps:$4 sm:$0xff]  }
 0x229   : > { %v1950_v42 = vadd.f32 1.0, %v3339_v2  ;;  %v3341_v49 = vpop.eup %3340  ;;  %v2075_v44 = vmul.f32 %v1947_v14, %v1563_v6  ;;  %v2077_v40 = vmul.f32 %v1949_v5, %v1565_v0  ;;  %3352 = verf.f32 %v1701_v11  ;;  %2601 = vmatpush1.bf16.msra.mxu1 %v2199_v29 }
 0x22a   : > { %v5148_v21 = vpop.f32.mrb[88].mxu0  ;;  %v5152_v52 = vadd.f32 %v5076_v61, %v5601_v19  ;;  %v3343_v53 = vpop.eup %3342  ;;  %v2076_v13 = vmul.f32 %v1948_v63, %v1564_v12  ;;  %3354 = verf.f32 %v1702_v36  ;;  %v1703_v33 = vmul.f32 0.70710677, %v5142_v30 }
 0x22b   : > { %v5154_v1 = vpop.f32.mrb[89].mxu0  ;;  %v2078_v32 = vmul.f32 %v1950_v42, %v1566_v38  ;;  %v2201_v61 = vpack.c.bf16 %v2077_v40, %v2075_v44  ;;  %v1568_v62 = vmul.f32 0.5, %v5085_v48  ;;  %v1569_v29 = vmul.f32 0.5, %v5091_v25  ;;  %v5602_v48 = vld [vmem:[#allocation24_spill] sm:$0xff] }
 0x22c   : > { %v5160_v6 = vpop.f32.mrb[90].mxu0  ;;  %v1570_v47 = vmul.f32 0.5, %v5095_v35  ;;  %v1951_v12 = vadd.f32 1.0, %v3341_v49  ;;  %3356 = verf.f32 %v1703_v33  ;;  %v1704_v0 = vmul.f32 0.70710677, %v5146_v26 }
 0x22d   : > { %v5168_v14 = vpop.f32.mrb[91].mxu0  ;;  %v2202_v15 = vpack.c.bf16 %v2078_v32, %v2076_v13  ;;  %v1952_v16 = vadd.f32 1.0, %v3343_v53  ;;  %v1705_v59 = vmul.f32 0.70710677, %v5152_v52  ;;  %v5174_v11 = vadd.f32 %v5079_v3, %v5601_v19  ;;  %2530 = vmatmul.mubr.bf16.gmra.mrb[36].mxu1 %v3085_v57  ;;  %v3088_v32 = vld [vmem:[%s5480_s3 + $0x40] ss:$16 sps:$4 sm:$0xff]  }
 0x22e   : > { %v3345_v63 = vpop.eup %3344  ;;  %v5178_v25 = vadd.f32 %v5105_v4, %v5602_v48  ;;  %v1571_v5 = vmul.f32 0.5, %v5103_v9  ;;  %3358 = verf.f32 %v1704_v0  ;;  %v5183_v38 = vadd.f32 %v5113_v39, %v5602_v48  ;;  %2539 = vmatprep.mubr.bf16.mxu1 %v3086_v54  ;;  %v5603_v4 = vld [vmem:[#allocation25_spill] sm:$0xff] }
 0x22f   : > { %v3347_v35 = vpop.eup %3346  ;;  %v1953_v2 = vadd.f32 1.0, %v3345_v63  ;;  %2602 = vmatprep.subr.bf16.mxu1 %v2202_v15  ;;  %3360 = verf.f32 %v1705_v59  ;;  %v1706_v3 = vmul.f32 0.70710677, %v5174_v11  ;;  %v5188_v56 = vadd.f32 %v5117_v51, %v5603_v4 }
 0x230   : > { %v3349_v36 = vpop.eup %3348  ;;  %v1954_v42 = vadd.f32 1.0, %v3347_v35  ;;  %2603 = vmatpush1.bf16.msra.mxu1 %v2201_v61  ;;  %v2079_v49 = vmul.f32 %v1951_v12, %v1567_v28  ;;  %v1572_v9 = vmul.f32 0.5, %v5121_v23  ;;  %v1707_v40 = vmul.f32 0.70710677, %v5178_v25  ;;  %v3089_v61 = vld [vmem:[%s5480_s3 + $0x64] ss:$16 sps:$4 sm:$0xff]  }
 0x231   : > { %v2081_v44 = vmul.f32 %v1953_v2, %v1569_v29  ;;  %v2080_v39 = vmul.f32 %v1952_v16, %v1568_v62  ;;  %3362 = verf.f32 %v1706_v3  ;;  %v1708_v53 = vmul.f32 0.70710677, %v5183_v38 }
 0x232   : > { %v1406_v19 = vpop.f32.mrb[92].mxu0  ;;  %v2082_v57 = vmul.f32 %v1954_v42, %v1570_v47  ;;  %v3351_v33 = vpop.eup %3350  ;;  %v1955_v54 = vadd.f32 1.0, %v3349_v36  ;;  %v1573_v28 = vmul.f32 0.5, %v5127_v50  ;;  %3364 = verf.f32 %v1707_v40  ;;  %v5604_v50 = vld [vmem:[#allocation26_spill] sm:$0xff] }
 0x233   : > { %v1408_v13 = vpop.f32.mrb[93].mxu0  ;;  %v2203_v51 = vpack.c.bf16 %v2081_v44, %v2079_v49  ;;  %v3353_v62 = vpop.eup %3352  ;;  %v1956_v29 = vadd.f32 1.0, %v3351_v33  ;;  %3366 = verf.f32 %v1708_v53  ;;  %v1709_v12 = vmul.f32 0.70710677, %v5188_v56 }
 0x234   : > { %v1410_v23 = vpop.f32.mrb[94].mxu0  ;;  %v2204_v47 = vpack.c.bf16 %v2082_v57, %v2080_v39  ;;  %v3355_v15 = vpop.eup %3354  ;;  %v1957_v63 = vadd.f32 1.0, %v3353_v62  ;;  %v5205_v16 = vadd.f32 %v5123_v17, %v5603_v4  ;;  %v5209_v59 = vadd.f32 %v5148_v21, %v5604_v50  ;;  %v5605_v21 = vld [vmem:[#allocation27_spill] sm:$0xff]  ;;  %v5606_v62 = vld [vmem:[#allocation28_spill] sm:$0xff] }
 0x235   : > { %v5201_v0 = vpop.f32.mrb[95].mxu0  ;;  %v5213_v48 = vadd.f32 %v5154_v1, %v5604_v50  ;;  %v1574_v35 = vmul.f32 0.5, %v5131_v27  ;;  %v1958_v2 = vadd.f32 1.0, %v3355_v15  ;;  %v1575_v36 = vmul.f32 0.5, %v5142_v30  ;;  %2540 = vmatmul.mubr.bf16.gmra.mrb[40].mxu1 %v3088_v32 }
 0x236   : > { %2604 = vmatprep.subr.bf16.mxu1 %v2204_v47  ;;  %3368 = verf.f32 %v1709_v12  ;;  %v3357_v42 = vpop.eup %3356  ;;  %v2083_v3 = vmul.f32 %v1955_v54, %v1571_v5  ;;  %v2085_v17 = vmul.f32 %v1957_v63, %v1573_v28  ;;  %v1710_v4 = vmul.f32 0.70710677, %v5205_v16  ;;  %2549 = vmatprep.mubr.bf16.mxu1 %v3089_v61 }
 0x237   : > { %2605 = vmatpush1.bf16.msra.mxu1 %v2203_v51  ;;  %v5220_v49 = vadd.f32 %v5160_v6, %v5605_v21  ;;  %v2084_v1 = vmul.f32 %v1956_v29, %v1572_v9  ;;  %v2086_v44 = vmul.f32 %v1958_v2, %v1574_v35  ;;  %v1576_v27 = vmul.f32 0.5, %v5146_v26  ;;  %v3091_v9 = vld [vmem:[%s5480_s3 + $0x60] ss:$16 sps:$4 sm:$0xff]  }
 0x238   : > { %v1711_v30 = vmul.f32 0.70710677, %v5209_v59  ;;  %v3359_v40 = vpop.eup %3358  ;;  %v2205_v39 = vpack.c.bf16 %v2085_v17, %v2083_v3  ;;  %v1959_v57 = vadd.f32 1.0, %v3357_v42  ;;  %3370 = verf.f32 %v1710_v4  ;;  %v5607_v42 = vld [vmem:[#allocation29_spill] sm:$0xff] }
 0x239   : > { %v1712_v5 = vmul.f32 0.70710677, %v5213_v48  ;;  %v3361_v53 = vpop.eup %3360  ;;  %v1577_v32 = vmul.f32 0.5, %v5152_v52  ;;  %v1578_v33 = vmul.f32 0.5, %v5174_v11  ;;  %v2206_v6 = vpack.c.bf16 %v2086_v44, %v2084_v1  ;;  %v3092_v52 = vld [vmem:[%s5480_s3 + $0x84] ss:$16 sps:$4 sm:$0xff]  }
 0x23a   : > { %3372 = verf.f32 %v1711_v30  ;;  %v1960_v26 = vadd.f32 1.0, %v3359_v40  ;;  %v1961_v51 = vadd.f32 1.0, %v3361_v53  ;;  %v1713_v54 = vmul.f32 0.70710677, %v5220_v49 }
 0x23b   : > { %v5233_v28 = vadd.f32 %v5168_v14, %v5605_v21  ;;  %v3363_v61 = vpop.eup %3362  ;;  %v1579_v11 = vmul.f32 0.5, %v5178_v25  ;;  %3374 = verf.f32 %v1712_v5  ;;  %2606 = vmatprep.subr.bf16.mxu1 %v2206_v6  ;;  %v5240_v29 = vadd.f32 %v1406_v19, %v5606_v62 }
 0x23c   : > { %v5243_v47 = vadd.f32 %v1408_v13, %v5606_v62  ;;  %v3365_v12 = vpop.eup %3364  ;;  %v2087_v15 = vmul.f32 %v1959_v57, %v1575_v36  ;;  %v2089_v63 = vmul.f32 %v1961_v51, %v1577_v32  ;;  %v1962_v14 = vadd.f32 1.0, %v3363_v61  ;;  %2607 = vmatpush1.bf16.msra.mxu1 %v2205_v39  ;;  %v5608_v57 = vld [vmem:[#allocation32_spill] sm:$0xff] }
 0x23d   : > { %3376 = verf.f32 %v1713_v54  ;;  %v3367_v50 = vpop.eup %3366  ;;  %v1963_v35 = vadd.f32 1.0, %v3365_v12  ;;  %v1714_v2 = vmul.f32 0.70710677, %v5233_v28  ;;  %v1715_v25 = vmul.f32 0.70710677, %v5240_v29  ;;  %2550 = vmatmul.mubr.bf16.gmra.mrb[44].mxu1 %v3091_v9 }
 0x23e   : > { %v5248_v3 = vadd.f32 %v1410_v23, %v5607_v42  ;;  %v2088_v19 = vmul.f32 %v1960_v26, %v1576_v27  ;;  %v2207_v17 = vpack.c.bf16 %v2089_v63, %v2087_v15  ;;  %v2090_v13 = vmul.f32 %v1962_v14, %v1578_v33  ;;  %2559 = vmatprep.mubr.bf16.mxu1 %v3092_v52  ;;  %v5610_v33 = vld [vmem:[#allocation35_spill] sm:$0xff] }
 0x23f   : > { %v1580_v4 = vmul.f32 0.5, %v5183_v38  ;;  %v1964_v21 = vadd.f32 1.0, %v3367_v50  ;;  %v1581_v1 = vmul.f32 0.5, %v5188_v56  ;;  %3378 = verf.f32 %v1714_v2  ;;  %v5609_v38 = vld [vmem:[#allocation33_spill] sm:$0xff]  ;;  %v3094_v56 = vld [vmem:[%s5480_s3 + $0x80] ss:$16 sps:$4 sm:$0xff]  }
 0x240   : > { %v3369_v36 = vpop.eup %3368  ;;  %v1716_v44 = vmul.f32 0.70710677, %v5243_v47  ;;  %v2091_v30 = vmul.f32 %v1963_v35, %v1579_v11  ;;  %3380 = verf.f32 %v1715_v25  ;;  %v2208_v39 = vpack.c.bf16 %v2090_v13, %v2088_v19 }
 0x241   : > { %v1965_v40 = vadd.f32 1.0, %v3369_v36  ;;  %v1717_v23 = vmul.f32 0.70710677, %v5248_v3  ;;  %v1413_v27 = vadd.f32 %v5201_v0, %v5607_v42  ;;  %v2216_v5 = vpack.c.bf16 %v5609_v38, %v5608_v57  ;;  %v3095_v0 = vld [vmem:[%s5480_s3 + $0xa4] ss:$16 sps:$4 sm:$0xff]  }
 0x242   : > { %3382 = verf.f32 %v1716_v44  ;;  %v3371_v53 = vpop.eup %3370  ;;  %2608 = vmatprep.subr.bf16.mxu1 %v2208_v39  ;;  %v2218_v6 = vpack.c.bf16 %v4588_v22, %v5610_v33  ;;  %v2220_v9 = vpack.c.bf16 %v4694_v18, %v4636_v24  ;;  %v2222_v26 = vpack.c.bf16 %v4730_v55, %v4707_v10  ;;  %v5614_v57 = vld [vmem:[#allocation36_spill] sm:$0xff]  ;;  %v5615_v38 = vld [vmem:[#allocation34_spill] sm:$0xff]  ;;  %v5620_v22 = vld [vmem:[#allocation43_spill] sm:$0xff] }
 0x243   : > { %v2093_v32 = vmul.f32 %v1965_v40, %v1581_v1  ;;  %v1582_v54 = vmul.f32 0.5, %v5205_v16  ;;  %v1966_v52 = vadd.f32 1.0, %v3371_v53  ;;  %3384 = verf.f32 %v1717_v23  ;;  %2609 = vmatpush1.bf16.msra.mxu1 %v2207_v17  ;;  %v3097_v1 = vld [vmem:[%s5480_s3 + $0xa0] ss:$16 sps:$4 sm:$0xff]  }
 0x244   : > { %v3373_v51 = vpop.eup %3372  ;;  %v1718_v61 = vmul.f32 0.70710677, %v1413_v27  ;;  %v2092_v11 = vmul.f32 %v1964_v21, %v1580_v4  ;;  %v2224_v12 = vpack.c.bf16 %v4785_v43, %v4749_v58  ;;  %v2226_v15 = vpack.c.bf16 %v4823_v34, %v4796_v8  ;;  %v5621_v33 = vld [vmem:[#allocation42_spill] sm:$0xff]  ;;  %v3104_v58 = vld [vmem:[%s5480_s3 + $0x8] ss:$16 sps:$4 sm:$0xff]  }
 0x245   : > { %v2209_v62 = vpack.c.bf16 %v2093_v32, %v2091_v30  ;;  %v3375_v63 = vpop.eup %3374  ;;  %v2094_v14 = vmul.f32 %v1966_v52, %v1582_v54  ;;  %v1967_v50 = vadd.f32 1.0, %v3373_v51  ;;  %2560 = vmatmul.mubr.bf16.gmra.mrb[48].mxu1 %v3094_v56  ;;  %v2228_v16 = vpack.c.bf16 %v4902_v46, %v4856_v37  ;;  %v5626_v18 = vld [vmem:[#allocation46_spill] sm:$0xff]  ;;  %v3107_v8 = vld [vmem:[%s5480_s3 + $0x2c] ss:$16 sps:$4 sm:$0xff]   ;;  %v3109_v34 = vld [vmem:[%s5480_s3 + $0x28] ss:$16 sps:$4 sm:$0xff]  }
 0x246   : > { %3386 = verf.f32 %v1718_v61  ;;  %2569 = vmatprep.mubr.bf16.mxu1 %v3095_v0  ;;  %v2230_v2 = vpack.c.bf16 %v4968_v31, %v4927_v20  ;;  %v1583_v25 = vmul.f32 0.5, %v5209_v59  ;;  %v1585_v42 = vmul.f32 0.5, %v5220_v49  ;;  %v3098_v59 = vld [vmem:[%s5480_s3 + $0xc4] ss:$16 sps:$4 sm:$0xff]   ;;  %v3113_v37 = vld [vmem:[%s5480_s3 + $0x6c] ss:$16 sps:$4 sm:$0xff]  }
 0x247   : > { %v3377_v35 = vpop.eup %3376  ;;  %v2210_v17 = vpack.c.bf16 %v2094_v14, %v2092_v11  ;;  %v1968_v13 = vadd.f32 1.0, %v3375_v63  ;;  %v1584_v30 = vmul.f32 0.5, %v5213_v48  ;;  %v1586_v40 = vmul.f32 0.5, %v5233_v28  ;;  %v3118_v46 = vld [vmem:[%s5480_s3 + $0x88] ss:$16 sps:$4 sm:$0xff]  }
 0x248   : > { %v1969_v19 = vadd.f32 1.0, %v3377_v35  ;;  %v2095_v36 = vmul.f32 %v1967_v50, %v1583_v25  ;;  %v1587_v51 = vmul.f32 0.5, %v5240_v29  ;;  %v1589_v48 = vmul.f32 0.5, %v5248_v3  ;;  %v3100_v29 = vld [vmem:[%s5480_s3 + $0xc0] ss:$16 sps:$4 sm:$0xff]  }
 0x249   : > { %v3379_v4 = vpop.eup %3378  ;;  %2610 = vmatprep.subr.bf16.mxu1 %v2210_v17  ;;  %v2096_v56 = vmul.f32 %v1968_v13, %v1584_v30  ;;  %v1588_v11 = vmul.f32 0.5, %v5243_v47  ;;  %v1590_v14 = vmul.f32 0.5, %v1413_v27  ;;  %v3101_v3 = vld [vmem:[%s5480_s3 + $0xe4] ss:$16 sps:$4 sm:$0xff]   ;;  %v3103_v47 = vld [vmem:[%s5480_s3 + $0xe0] ss:$16 sps:$4 sm:$0xff]   ;;  %v5629_v55 = vpack.c.bf16 %v4839_v41, %v4825_v60 }
 0x24a   : > { %v2097_v21 = vmul.f32 %v1969_v19, %v1585_v42  ;;  %v3381_v44 = vpop.eup %3380  ;;  %v1970_v39 = vadd.f32 1.0, %v3379_v4  ;;  %2611 = vmatpush1.bf16.msra.mxu1 %v2209_v62  ;;  %v3106_v27 = vld [vmem:[%s5480_s3 + $0xc] ss:$16 sps:$4 sm:$0xff]   ;;  %v5612_v13 = vld [vmem:[#allocation30_spill] sm:$0xff]  ;;  %v5624_v30 = vld [vmem:[#allocation44_spill] sm:$0xff]  ;;  %v5630_v43 = vpack.c.bf16 %v4895_v7, %v4881_v45 }
 0x24b   : > { %v1971_v32 = vadd.f32 1.0, %v3381_v44  ;;  %v5611_v17 = vld [vmem:[#allocation31_spill] sm:$0xff]  ;;  %v5623_v44 = vld [vmem:[#allocation45_spill] sm:$0xff] }
 0x24c   : > { %v3383_v49 = vpop.eup %3382  ;;  %v2211_v23 = vpack.c.bf16 %v2097_v21, %v2095_v36  ;;  %v2098_v53 = vmul.f32 %v1970_v39, %v1586_v40  ;;  %v5613_v4 = vpack.c.bf16 %v5611_v17, %v5612_v13  ;;  %v5617_v36 = vld [vmem:[#allocation41_spill] sm:$0xff]  ;;  %v5618_v21 = vld [vmem:[#allocation40_spill] sm:$0xff]  ;;  %v5625_v24 = vpack.c.bf16 %v5623_v44, %v5624_v30  ;;  %v3393_v17 = vld [vmem:[%s3501_s25 + $0x28] sm:$0xff] }
 0x24d   : > { %v3385_v0 = vpop.eup %3384  ;;  %2570 = vmatmul.mubr.bf16.gmra.mrb[52].mxu1 %v3097_v1  ;;  %v1972_v54 = vadd.f32 1.0, %v3383_v49  ;;  %v2099_v62 = vmul.f32 %v1971_v32, %v1587_v51  ;;  %v5619_v1 = vpack.c.bf16 %v5617_v36, %v5618_v21  ;;  %v3110_v60 = vld [vmem:[%s5480_s3 + $0x4c] ss:$16 sps:$4 sm:$0xff]   ;;  %v3112_v41 = vld [vmem:[%s5480_s3 + $0x48] ss:$16 sps:$4 sm:$0xff]   ;;  %v2255_v49 = vpop.permute.xlu1 %2254 }
 0x24e   : > { %v1973_v52 = vadd.f32 1.0, %v3385_v0  ;;  %v2212_v28 = vpack.c.bf16 %v2098_v53, %v2096_v56  ;;  %2579 = vmatprep.mubr.bf16.mxu1 %v3098_v59  ;;  %v3115_v45 = vld [vmem:[%s5480_s3 + $0x68] ss:$16 sps:$4 sm:$0xff]   ;;  %v3116_v7 = vld [vmem:[%s5480_s3 + $0x8c] ss:$16 sps:$4 sm:$0xff]   ;;  %v3388_v53 = vld [vmem:[%s3501_s25] sm:$0xff] }
 0x24f   : > { %v2100_v35 = vmul.f32 %v1972_v54, %v1588_v11  ;;  %v3119_v20 = vld [vmem:[%s5480_s3 + $0xac] ss:$16 sps:$4 sm:$0xff]   ;;  %v3121_v31 = vld [vmem:[%s5480_s3 + $0xa8] ss:$16 sps:$4 sm:$0xff]  }
 0x250   : > { %v3387_v61 = vpop.eup %3386  ;;  %v2101_v63 = vmul.f32 %v1973_v52, %v1589_v48  ;;  %2612 = vmatprep.subr.bf16.mxu1 %v2212_v28  ;;  %v3389_v54 = vld [vmem:[%s3501_s25 + $0x8] sm:$0xff]  ;;  %v3390_v28 = vld [vmem:[%s3501_s25 + $0x10] sm:$0xff]  ;;  %v3391_v11 = vld [vmem:[%s3501_s25 + $0x18] sm:$0xff] }
 0x251   : > { %v1974_v50 = vadd.f32 1.0, %v3387_v61  ;;  %2613 = vmatpush1.bf16.msra.mxu1 %v2211_v23 }
 0x252   : > { %v2213_v25 = vpack.c.bf16 %v2101_v63, %v2099_v62 }
 0x253   : > { %v2102_v42 = vmul.f32 %v1974_v50, %v1590_v14 }
 0x255   : > { %v2214_v19 = vpack.c.bf16 %v2102_v42, %v2100_v35  ;;  %2580 = vmatmul.mubr.bf16.gmra.mrb[56].mxu1 %v3100_v29  ;;  %v2265_v35 = vpop.permute.xlu1 %2264 }
 0x256   : > { %2589 = vmatprep.mubr.bf16.mxu1 %v3101_v3  ;;  %v3392_v3 = vld [vmem:[%s3501_s25 + $0x20] sm:$0xff] }
 0x257   : > { %2614 = vmatprep.subr.bf16.mxu1 %v2214_v19 }
 0x258   : > { %2615 = vmatpush1.bf16.msra.mxu1 %v2213_v25 }
 0x259   : > { %2616 = vmatprep.subr.bf16.mxu1 %v2216_v5  ;;  %v5616_v5 = vpack.c.bf16 %v5614_v57, %v5615_v38  ;;  %v3394_v57 = vld [vmem:[%s3501_s25 + $0x30] sm:$0xff] }
 0x25c   : > { %2617 = vmatpush1.bf16.msra.mxu1 %v5613_v4 }
 0x25d   : > { %2618 = vmatprep.subr.bf16.mxu1 %v2218_v6  ;;  %2590 = vmatmul.mubr.bf16.gmra.mrb[60].mxu1 %v3103_v47  ;;  %v5622_v6 = vpack.c.bf16 %v5620_v22, %v5621_v33 }
 0x25e   : > { %2632 = vmatprep.mubr.bf16.mxu1 %v3106_v27 }
 0x260   : > { %2619 = vmatpush1.bf16.msra.mxu1 %v5616_v5  ;;  %v3395_v5 = vld [vmem:[%s3501_s25 + $0x38] sm:$0xff] }
 0x261   : > { %2620 = vmatprep.subr.bf16.mxu1 %v2220_v9  ;;  %v5627_v9 = vld [vmem:[#allocation37_spill] sm:$0xff] }
 0x262   : > { %v5628_v10 = vpack.c.bf16 %v5626_v18, %v5627_v9 }
 0x264   : > { %2621 = vmatpush1.bf16.msra.mxu1 %v5619_v1 }
 0x265   : > { %2622 = vmatprep.subr.bf16.mxu1 %v2222_v26  ;;  %v3122_v26 = vld [vmem:[%s5480_s3 + $0xcc] ss:$16 sps:$4 sm:$0xff]  }
 0x268   : > { %2623 = vmatpush1.bf16.msra.mxu1 %v5622_v6  ;;  %v2275_v6 = vpop.permute.xlu1 %2274 }
 0x269   : > { %2624 = vmatprep.subr.bf16.mxu1 %v2224_v12  ;;  %v3124_v12 = vld [vmem:[%s5480_s3 + $0xc8] ss:$16 sps:$4 sm:$0xff]  }
 0x26c   : > { %2625 = vmatpush1.bf16.msra.mxu1 %v5625_v24  ;;  %v3396_v24 = vld [vmem:[%s3501_s25 + $0x40] sm:$0xff] }
 0x26d   : > { %2626 = vmatprep.subr.bf16.mxu1 %v2226_v15  ;;  %v3125_v15 = vld [vmem:[%s5480_s3 + $0xec] ss:$16 sps:$4 sm:$0xff]  }
 0x270   : > { %2627 = vmatpush1.bf16.msra.mxu1 %v5628_v10 }
 0x271   : > { %2628 = vmatprep.subr.bf16.mxu1 %v2228_v16  ;;  %v3127_v16 = vld [vmem:[%s5480_s3 + $0xe8] ss:$16 sps:$4 sm:$0xff]  }
 0x274   : > { %2629 = vmatpush1.bf16.msra.mxu1 %v5629_v55  ;;  %v3397_v55 = vld [vmem:[%s3501_s25 + $0x48] sm:$0xff] }
 0x275   : > { %2630 = vmatprep.subr.bf16.mxu1 %v2230_v2  ;;  %v2250_v2 = vpop.permute.xlu0 %2249 }
 0x278   : > { %2631 = vmatpush1.bf16.msra.mxu1 %v5630_v43 }
 0x279   : > { %v2260_v63 = vpop.permute.xlu0 %2259 }
 0x27b   : > { %2633 = vmatmul.mubr.bf16.vlgmr.msra.gmra.mrb[32].mxu1 %v3104_v58 }
 0x27c   : > { %2642 = vmatprep.mubr.bf16.mxu1 %v3107_v8  ;;  %v3398_v8 = vld [vmem:[%s3501_s25 + $0x50] sm:$0xff] }
 0x27d   : > { %v2270_v21 = vpop.permute.xlu0 %2269 }
 0x283   : > { %2643 = vmatmul.mubr.bf16.gmra.mrb[36].mxu1 %v3109_v34 }
 0x284   : > { %2652 = vmatprep.mubr.bf16.mxu1 %v3110_v60  ;;  %v3399_v60 = vld [vmem:[%s3501_s25 + $0x58] sm:$0xff] }
 0x28b   : > { %2653 = vmatmul.mubr.bf16.gmra.mrb[40].mxu1 %v3112_v41 }
 0x28c   : > { %2662 = vmatprep.mubr.bf16.mxu1 %v3113_v37  ;;  %v2280_v37 = vpop.permute.xlu0 %2279 }
 0x293   : > { %2663 = vmatmul.mubr.bf16.gmra.mrb[44].mxu1 %v3115_v45 }
 0x294   : > { %2672 = vmatprep.mubr.bf16.mxu1 %v3116_v7 }
 0x29b   : > { %2673 = vmatmul.mubr.bf16.gmra.mrb[48].mxu1 %v3118_v46 }
 0x29c   : > { %2682 = vmatprep.mubr.bf16.mxu1 %v3119_v20  ;;  %v2285_v20 = vpop.permute.xlu1 %2284 }
 0x2a3   : > { %2683 = vmatmul.mubr.bf16.gmra.mrb[52].mxu1 %v3121_v31 }
 0x2a4   : > { %2692 = vmatprep.mubr.bf16.mxu1 %v3122_v26 }
 0x2ab   : > { %2693 = vmatmul.mubr.bf16.gmra.mrb[56].mxu1 %v3124_v12  ;;  %v3400_v12 = vld [vmem:[%s3501_s25 + $0x60] sm:$0xff] }
 0x2ac   : > { %2702 = vmatprep.mubr.bf16.mxu1 %v3125_v15 }
 0x2b3   : > { %2703 = vmatmul.mubr.bf16.gmra.mrb[60].mxu1 %v3127_v16 }
 0x34e   : > { %v2634_v40 = vpop.f32.mrb[32].mxu1 }
 0x34f   : > { %v2957_v39 = vadd.f32 %v2634_v40, %v2250_v2  ;;  %v2636_v59 = vpop.f32.mrb[33].mxu1  ;;  %v3401_v40 = vld [vmem:[%s3501_s25 + $0x68] sm:$0xff] }
 0x350   : > { %v2958_v23 = vadd.f32 %v2636_v59, %v2250_v2  ;;  %v2638_v56 = vpop.f32.mrb[34].mxu1 }
 0x351   : > { %v2713_v32 = vadd.f32 %v3388_v53, %v2957_v39  ;;  %v2959_v0 = vadd.f32 %v2638_v56, %v2255_v49  ;;  %v2640_v51 = vpop.f32.mrb[35].mxu1  ;;  %v3403_v56 = vld [vmem:[%s3501_s25 + $0x78] sm:$0xff] }
 0x352   : > { %v2714_v48 = vadd.f32 %v3389_v54, %v2958_v23  ;;  %v2960_v52 = vadd.f32 %v2640_v51, %v2255_v49  ;;  %v3402_v49 = vld [vmem:[%s3501_s25 + $0x70] sm:$0xff] }
 0x353   : > { %2745 = vst [vmem:[%s5402_s6] sm:$0xff] %v2713_v32  ;;  %v2715_v61 = vadd.f32 %v3390_v28, %v2959_v0  ;;  %v2290_v32 = vpop.permute.xlu0 %2289 }
 0x354   : > { %2746 = vst [vmem:[%s5402_s6 + $0x8] sm:$0xff] %v2714_v48  ;;  %v2716_v62 = vadd.f32 %v3391_v11, %v2960_v52  ;;  %v2295_v48 = vpop.permute.xlu1 %2294 }
 0x355   : > { %2747 = vst [vmem:[%s5402_s6 + $0x10] sm:$0xff] %v2715_v61  ;;  %v3404_v61 = vld [vmem:[%s3501_s25 + $0x80] sm:$0xff] }
 0x356   : > { %2748 = vst [vmem:[%s5402_s6 + $0x18] sm:$0xff] %v2716_v62  ;;  %v2644_v14 = vpop.f32.mrb[36].mxu1 }
 0x357   : > { %v2961_v50 = vadd.f32 %v2644_v14, %v2260_v63  ;;  %v2646_v29 = vpop.f32.mrb[37].mxu1  ;;  %v3405_v14 = vld [vmem:[%s3501_s25 + $0x88] sm:$0xff] }
 0x358   : > { %v2962_v25 = vadd.f32 %v2646_v29, %v2260_v63  ;;  %v2648_v42 = vpop.f32.mrb[38].mxu1 }
 0x359   : > { %v2717_v19 = vadd.f32 %v3392_v3, %v2961_v50  ;;  %v2963_v47 = vadd.f32 %v2648_v42, %v2265_v35  ;;  %v2650_v27 = vpop.f32.mrb[39].mxu1  ;;  %v3407_v42 = vld [vmem:[%s3501_s25 + $0x98] sm:$0xff] }
 0x35a   : > { %v2718_v13 = vadd.f32 %v3393_v17, %v2962_v25  ;;  %v2964_v4 = vadd.f32 %v2650_v27, %v2265_v35  ;;  %v3406_v35 = vld [vmem:[%s3501_s25 + $0x90] sm:$0xff] }
 0x35b   : > { %2749 = vst [vmem:[%s5402_s6 + $0x20] sm:$0xff] %v2717_v19  ;;  %v2719_v38 = vadd.f32 %v3394_v57, %v2963_v47  ;;  %v2300_v19 = vpop.permute.xlu0 %2299 }
 0x35c   : > { %2750 = vst [vmem:[%s5402_s6 + $0x28] sm:$0xff] %v2718_v13  ;;  %v2720_v36 = vadd.f32 %v3395_v5, %v2964_v4  ;;  %v2305_v13 = vpop.permute.xlu1 %2304 }
 0x35d   : > { %2751 = vst [vmem:[%s5402_s6 + $0x30] sm:$0xff] %v2719_v38  ;;  %v3408_v38 = vld [vmem:[%s3501_s25 + $0xa0] sm:$0xff] }
 0x35e   : > { %2752 = vst [vmem:[%s5402_s6 + $0x38] sm:$0xff] %v2720_v36  ;;  %v2654_v1 = vpop.f32.mrb[40].mxu1 }
 0x35f   : > { %v2965_v22 = vadd.f32 %v2654_v1, %v2270_v21  ;;  %v2656_v33 = vpop.f32.mrb[41].mxu1  ;;  %v3409_v1 = vld [vmem:[%s3501_s25 + $0xa8] sm:$0xff] }
 0x360   : > { %v2966_v44 = vadd.f32 %v2656_v33, %v2270_v21  ;;  %v2658_v30 = vpop.f32.mrb[42].mxu1 }
 0x361   : > { %v2721_v18 = vadd.f32 %v3396_v24, %v2965_v22  ;;  %v2967_v9 = vadd.f32 %v2658_v30, %v2275_v6  ;;  %v2660_v10 = vpop.f32.mrb[43].mxu1  ;;  %v3411_v30 = vld [vmem:[%s3501_s25 + $0xb8] sm:$0xff] }
 0x362   : > { %v2722_v58 = vadd.f32 %v3397_v55, %v2966_v44  ;;  %v2968_v43 = vadd.f32 %v2660_v10, %v2275_v6  ;;  %v3410_v6 = vld [vmem:[%s3501_s25 + $0xb0] sm:$0xff] }
 0x363   : > { %2753 = vst [vmem:[%s5402_s6 + $0x40] sm:$0xff] %v2721_v18  ;;  %v2723_v34 = vadd.f32 %v3398_v8, %v2967_v9  ;;  %v2310_v18 = vpop.permute.xlu0 %2309 }
 0x364   : > { %2754 = vst [vmem:[%s5402_s6 + $0x48] sm:$0xff] %v2722_v58  ;;  %v2724_v41 = vadd.f32 %v3399_v60, %v2968_v43  ;;  %v2315_v58 = vpop.permute.xlu1 %2314 }
 0x365   : > { %2755 = vst [vmem:[%s5402_s6 + $0x50] sm:$0xff] %v2723_v34  ;;  %v3412_v34 = vld [vmem:[%s3501_s25 + $0xc0] sm:$0xff] }
 0x366   : > { %2756 = vst [vmem:[%s5402_s6 + $0x58] sm:$0xff] %v2724_v41  ;;  %v2664_v45 = vpop.f32.mrb[44].mxu1 }
 0x367   : > { %v2969_v7 = vadd.f32 %v2664_v45, %v2280_v37  ;;  %v2666_v46 = vpop.f32.mrb[45].mxu1  ;;  %v3413_v45 = vld [vmem:[%s3501_s25 + $0xc8] sm:$0xff] }
 0x368   : > { %v2970_v31 = vadd.f32 %v2666_v46, %v2280_v37  ;;  %v2668_v26 = vpop.f32.mrb[46].mxu1 }
 0x369   : > { %v2725_v15 = vadd.f32 %v3400_v12, %v2969_v7  ;;  %v2971_v16 = vadd.f32 %v2668_v26, %v2285_v20  ;;  %v2670_v2 = vpop.f32.mrb[47].mxu1  ;;  %v3415_v26 = vld [vmem:[%s3501_s25 + $0xd8] sm:$0xff] }
 0x36a   : > { %v2726_v39 = vadd.f32 %v3401_v40, %v2970_v31  ;;  %v2972_v59 = vadd.f32 %v2670_v2, %v2285_v20  ;;  %v3414_v20 = vld [vmem:[%s3501_s25 + $0xd0] sm:$0xff] }
 0x36b   : > { %2757 = vst [vmem:[%s5402_s6 + $0x60] sm:$0xff] %v2725_v15  ;;  %v2727_v23 = vadd.f32 %v3402_v49, %v2971_v16  ;;  %v2320_v15 = vpop.permute.xlu0 %2319 }
 0x36c   : > { %2758 = vst [vmem:[%s5402_s6 + $0x68] sm:$0xff] %v2726_v39  ;;  %v2728_v53 = vadd.f32 %v3403_v56, %v2972_v59  ;;  %v2325_v39 = vpop.permute.xlu1 %2324 }
 0x36d   : > { %2759 = vst [vmem:[%s5402_s6 + $0x70] sm:$0xff] %v2727_v23  ;;  %v3416_v23 = vld [vmem:[%s3501_s25 + $0xe0] sm:$0xff] }
 0x36e   : > { %2760 = vst [vmem:[%s5402_s6 + $0x78] sm:$0xff] %v2728_v53  ;;  %v2674_v0 = vpop.f32.mrb[48].mxu1 }
 0x36f   : > { %v2973_v51 = vadd.f32 %v2674_v0, %v2290_v32  ;;  %v2676_v54 = vpop.f32.mrb[49].mxu1  ;;  %v3417_v0 = vld [vmem:[%s3501_s25 + $0xe8] sm:$0xff] }
 0x370   : > { %v2974_v52 = vadd.f32 %v2676_v54, %v2290_v32  ;;  %v2678_v28 = vpop.f32.mrb[50].mxu1 }
 0x371   : > { %v2729_v11 = vadd.f32 %v3404_v61, %v2973_v51  ;;  %v2975_v62 = vadd.f32 %v2678_v28, %v2295_v48  ;;  %v2680_v63 = vpop.f32.mrb[51].mxu1  ;;  %v3419_v28 = vld [vmem:[%s3501_s25 + $0xf8] sm:$0xff] }
 0x372   : > { %v2730_v50 = vadd.f32 %v3405_v14, %v2974_v52  ;;  %v2976_v29 = vadd.f32 %v2680_v63, %v2295_v48  ;;  %v3418_v48 = vld [vmem:[%s3501_s25 + $0xf0] sm:$0xff] }
 0x373   : > { %2761 = vst [vmem:[%s5402_s6 + $0x80] sm:$0xff] %v2729_v11  ;;  %v2731_v25 = vadd.f32 %v3406_v35, %v2975_v62 }
 0x374   : > { %2762 = vst [vmem:[%s5402_s6 + $0x88] sm:$0xff] %v2730_v50  ;;  %v2732_v3 = vadd.f32 %v3407_v42, %v2976_v29 }
 0x375   : > { %2763 = vst [vmem:[%s5402_s6 + $0x90] sm:$0xff] %v2731_v25 }
 0x376   : > { %2764 = vst [vmem:[%s5402_s6 + $0x98] sm:$0xff] %v2732_v3  ;;  %v2684_v47 = vpop.f32.mrb[52].mxu1 }
 0x377   : > { %v2977_v27 = vadd.f32 %v2684_v47, %v2300_v19  ;;  %v2686_v17 = vpop.f32.mrb[53].mxu1 }
 0x378   : > { %v2978_v4 = vadd.f32 %v2686_v17, %v2300_v19  ;;  %v2688_v57 = vpop.f32.mrb[54].mxu1 }
 0x379   : > { %v2733_v5 = vadd.f32 %v3408_v38, %v2977_v27  ;;  %v2979_v36 = vadd.f32 %v2688_v57, %v2305_v13  ;;  %v2690_v21 = vpop.f32.mrb[55].mxu1 }
 0x37a   : > { %v2734_v22 = vadd.f32 %v3409_v1, %v2978_v4  ;;  %v2980_v33 = vadd.f32 %v2690_v21, %v2305_v13 }
 0x37b   : > { %2765 = vst [vmem:[%s5402_s6 + $0xa0] sm:$0xff] %v2733_v5  ;;  %v2735_v44 = vadd.f32 %v3410_v6, %v2979_v36 }
 0x37c   : > { %2766 = vst [vmem:[%s5402_s6 + $0xa8] sm:$0xff] %v2734_v22  ;;  %v2736_v24 = vadd.f32 %v3411_v30, %v2980_v33 }
 0x37d   : > { %2767 = vst [vmem:[%s5402_s6 + $0xb0] sm:$0xff] %v2735_v44 }
 0x37e   : > { %2768 = vst [vmem:[%s5402_s6 + $0xb8] sm:$0xff] %v2736_v24  ;;  %v2694_v9 = vpop.f32.mrb[56].mxu1 }
 0x37f   : > { %v2981_v10 = vadd.f32 %v2694_v9, %v2310_v18  ;;  %v2696_v55 = vpop.f32.mrb[57].mxu1 }
 0x380   : > { %v2982_v43 = vadd.f32 %v2696_v55, %v2310_v18  ;;  %v2698_v8 = vpop.f32.mrb[58].mxu1 }
 0x381   : > { %v2737_v60 = vadd.f32 %v3412_v34, %v2981_v10  ;;  %v2983_v41 = vadd.f32 %v2698_v8, %v2315_v58  ;;  %v2700_v37 = vpop.f32.mrb[59].mxu1 }
 0x382   : > { %v2738_v7 = vadd.f32 %v3413_v45, %v2982_v43  ;;  %v2984_v46 = vadd.f32 %v2700_v37, %v2315_v58 }
 0x383   : > { %2769 = vst [vmem:[%s5402_s6 + $0xc0] sm:$0xff] %v2737_v60  ;;  %v2739_v31 = vadd.f32 %v3414_v20, %v2983_v41 }
 0x384   : > { %2770 = vst [vmem:[%s5402_s6 + $0xc8] sm:$0xff] %v2738_v7  ;;  %v2740_v12 = vadd.f32 %v3415_v26, %v2984_v46 }
 0x385   : > { %2771 = vst [vmem:[%s5402_s6 + $0xd0] sm:$0xff] %v2739_v31 }
 0x386   : > { %2772 = vst [vmem:[%s5402_s6 + $0xd8] sm:$0xff] %v2740_v12  ;;  %v2704_v16 = vpop.f32.mrb[60].mxu1 }
 0x387   : > { %v2985_v2 = vadd.f32 %v2704_v16, %v2320_v15  ;;  %v2706_v40 = vpop.f32.mrb[61].mxu1 }
 0x388   : > { %v2986_v59 = vadd.f32 %v2706_v40, %v2320_v15  ;;  %v2708_v49 = vpop.f32.mrb[62].mxu1 }
 0x389   : > { %v2741_v56 = vadd.f32 %v3416_v23, %v2985_v2  ;;  %v2987_v53 = vadd.f32 %v2708_v49, %v2325_v39  ;;  %v2710_v32 = vpop.f32.mrb[63].mxu1 }
 0x38a   : > { %v2742_v51 = vadd.f32 %v3417_v0, %v2986_v59  ;;  %v2988_v54 = vadd.f32 %v2710_v32, %v2325_v39 }
 0x38b   : > { %2773 = vst [vmem:[%s5402_s6 + $0xe0] sm:$0xff] %v2741_v56  ;;  %v2743_v52 = vadd.f32 %v3418_v48, %v2987_v53 }
 0x38c   : > { %2774 = vst [vmem:[%s5402_s6 + $0xe8] sm:$0xff] %v2742_v51  ;;  %v2744_v61 = vadd.f32 %v3419_v28, %v2988_v54 }
 0x38d   : > { %2775 = vst [vmem:[%s5402_s6 + $0xf0] sm:$0xff] %v2743_v52 }
 0x38e   : > { %2776 = vst [vmem:[%s5402_s6 + $0xf8] sm:$0xff] %v2744_v61 }
 0x38f PF: > { %s15_s20 = sadd.s32 1, %s3442_s20   ;;  %s5631_s18 = smov %s3438_s19 }
 0x390   : > { %p12_p5 = scmp.ge.s32.totalorder %s15_s20, 4   ;;  %s5632_s19 = smov %s5634_s21 }
 0x392   :  { %14 = sbr.rel (!%p12_p5) target bundleno = 2 (0x2), region = 70 }

</bundles_post_ra>
